<compile_context>
chip_gen: v7x
topology: tpu7x:2x2x1
jax: 0.10.0
libtpu: 0.0.40
codegen_flags: <defaults>
</compile_context>

<pallas_src>
import functools

import jax
import jax.numpy as jnp
import numpy as np
from jax.experimental import pallas as pl
from jax.experimental.pallas import tpu as pltpu

NHIDDEN = 64          # SPADE hidden channels (fixed in the PyTorch module)
LEAKY_SLOPE = 0.2     # GenBlock.actvn
IN_EPS = 1e-5         # nn.InstanceNorm2d default eps


# --------------------------- in-kernel helpers -------------------------------

def _instance_norm_val(x):
    # x: (H, W, C) f32. InstanceNorm2d(affine=False): per-channel biased stats
    # over the full spatial extent.
    mean = jnp.mean(x, axis=(0, 1), keepdims=True)
    var = jnp.mean((x - mean) ** 2, axis=(0, 1), keepdims=True)
    return (x - mean) * jax.lax.rsqrt(var + IN_EPS)


def _reflect_pad_conv3x3(h, hp_ref, w_ref, H, W, Cout):
    """1-px reflection pad built in a VMEM scratch + 3x3 conv as 9 bf16 MXU matmuls.

    h:      (H, W, Cin) f32 value (already modulated / activated).
    hp_ref: (H+2, W+2, Cin) f32 VMEM scratch.
    w_ref:  (3, 3, Cin, Cout) bf16 weights.
    Returns f32 accumulator of shape (H*W, Cout).
    """
    Cin = h.shape[-1]
    # interior
    hp_ref[1:H + 1, 1:W + 1, :] = h
    # top / bottom reflected rows (ReflectionPad2d(1): row -1 -> row 1, row H -> row H-2)
    hp_ref[0:1, 1:W + 1, :] = h[1:2]
    hp_ref[H + 1:H + 2, 1:W + 1, :] = h[H - 2:H - 1]
    # left / right reflected columns (copied from already-padded columns so the
    # corners come out right: padded[0,0] = h[1,1], etc.)
    hp_ref[:, 0:1, :] = hp_ref[:, 2:3, :]
    hp_ref[:, W + 1:W + 2, :] = hp_ref[:, W - 1:W, :]

    acc = jnp.zeros((H * W, Cout), jnp.float32)
    for dy in range(3):                               # 9 shifted MXU matmuls
        for dx in range(3):
            patch = hp_ref[dy:dy + H, dx:dx + W, :].reshape(H * W, Cin)
            acc = acc + jnp.dot(patch.astype(jnp.bfloat16), w_ref[dy, dx],
                                preferred_element_type=jnp.float32)
    return acc


# --------------------------- Pallas kernels ----------------------------------

def _conv3x3_kernel(x_ref, w_ref, b_ref, o_ref, hp_ref, *, act):
    # Plain ReflectionPad2d(1) + Conv2d(k=3) (+ optional ReLU).
    # x_ref: (1,H,W,Cin)  w_ref: (3,3,Cin,Cout) bf16  b_ref: (1,Cout) f32
    _, H, W, Cout = o_ref.shape
    x = x_ref[0].astype(jnp.float32)
    acc = _reflect_pad_conv3x3(x, hp_ref, w_ref, H, W, Cout) + b_ref[...]
    if act == "relu":
        acc = jnp.maximum(acc, 0.0)
    o_ref[...] = acc.reshape(1, H, W, Cout).astype(o_ref.dtype)


def _spade_conv3x3_kernel(*refs, leaky, add_res):
    # Fused: InstanceNorm -> SPADE modulation -> (leaky ReLU) -> reflect pad ->
    #        3x3 conv (+ bias) (+ residual add).
    if add_res:
        x_ref, gb_ref, w_ref, b_ref, res_ref, o_ref, hp_ref = refs
    else:
        x_ref, gb_ref, w_ref, b_ref, o_ref, hp_ref = refs
        res_ref = None
    _, H, W, Cout = o_ref.shape
    Cin = x_ref.shape[3]

    normed = _instance_norm_val(x_ref[0])
    gb = gb_ref[0]                                    # (H, W, 2*Cin): [gamma | beta]
    h = normed * (1.0 + gb[:, :, :Cin]) + gb[:, :, Cin:]
    if leaky:
        h = jnp.where(h >= 0.0, h, LEAKY_SLOPE * h)

    acc = _reflect_pad_conv3x3(h, hp_ref, w_ref, H, W, Cout) + b_ref[...]
    if add_res:
        acc = acc + res_ref[0].reshape(H * W, Cout)
    o_ref[...] = acc.reshape(1, H, W, Cout).astype(o_ref.dtype)


def _spade_conv1x1_kernel(x_ref, gb_ref, w_ref, o_ref):
    # Fused learned shortcut: InstanceNorm -> SPADE modulation -> 1x1 conv (no bias).
    _, H, W, Cout = o_ref.shape
    Cin = x_ref.shape[3]
    normed = _instance_norm_val(x_ref[0])
    gb = gb_ref[0]
    h = normed * (1.0 + gb[:, :, :Cin]) + gb[:, :, Cin:]
    y = jnp.dot(h.reshape(H * W, Cin).astype(jnp.bfloat16), w_ref[...],
                preferred_element_type=jnp.float32)
    o_ref[...] = y.reshape(1, H, W, Cout)


# --------------------------- Pallas wrappers ----------------------------------

def _nhwc_spec(shape):
    # one (1, H, W, C) block per grid step over batch; last two dims are full
    # extent so the (8, 128) divisibility rule does not apply.
    return pl.BlockSpec((1,) + tuple(shape[1:]), lambda n: (n, 0, 0, 0))


def conv3x3_reflect(x, w_oihw, bias, act="none", out_dtype=jnp.float32):
    """ReflectionPad2d(1) + Conv2d(k=3, padding=0) with pad built in-kernel."""
    N, H, W, Cin = x.shape
    Cout = w_oihw.shape[0]
    w_hwio = jnp.transpose(w_oihw, (2, 3, 1, 0)).astype(jnp.bfloat16)
    b2 = bias.reshape(1, Cout).astype(jnp.float32)
    return pl.pallas_call(
        functools.partial(_conv3x3_kernel, act=act),
        out_shape=jax.ShapeDtypeStruct((N, H, W, Cout), out_dtype),
        grid=(N,),
        in_specs=[
            _nhwc_spec(x.shape),
            pl.BlockSpec((3, 3, Cin, Cout), lambda n: (0, 0, 0, 0)),
            pl.BlockSpec((1, Cout), lambda n: (0, 0)),
        ],
        out_specs=pl.BlockSpec((1, H, W, Cout), lambda n: (n, 0, 0, 0)),
        scratch_shapes=[pltpu.VMEM((H + 2, W + 2, Cin), jnp.float32)],
        compiler_params=pltpu.CompilerParams(dimension_semantics=("parallel",)),
    )(x, w_hwio, b2)


def spade_conv3x3(x, gb, w_oihw, bias, residual=None, leaky=True):
    """Fused SPADE(x; gamma,beta) -> (leaky) -> reflect-pad conv3x3 (-> + residual)."""
    N, H, W, Cin = x.shape
    Cout = w_oihw.shape[0]
    w_hwio = jnp.transpose(w_oihw, (2, 3, 1, 0)).astype(jnp.bfloat16)
    b2 = bias.reshape(1, Cout).astype(jnp.float32)
    add_res = residual is not None

    in_specs = [
        _nhwc_spec(x.shape),
        _nhwc_spec(gb.shape),
        pl.BlockSpec((3, 3, Cin, Cout), lambda n: (0, 0, 0, 0)),
        pl.BlockSpec((1, Cout), lambda n: (0, 0)),
    ]
    args = [x, gb, w_hwio, b2]
    if add_res:
        in_specs.append(_nhwc_spec(residual.shape))
        args.append(residual)

    return pl.pallas_call(
        functools.partial(_spade_conv3x3_kernel, leaky=leaky, add_res=add_res),
        out_shape=jax.ShapeDtypeStruct((N, H, W, Cout), jnp.float32),
        grid=(N,),
        in_specs=in_specs,
        out_specs=pl.BlockSpec((1, H, W, Cout), lambda n: (n, 0, 0, 0)),
        scratch_shapes=[pltpu.VMEM((H + 2, W + 2, Cin), jnp.float32)],
        compiler_params=pltpu.CompilerParams(dimension_semantics=("parallel",)),
    )(*args)


def spade_conv1x1(x, gb, w_mat):
    """Fused SPADE(x; gamma,beta) -> Conv2d(k=1, bias=False). w_mat: (Cin, Cout)."""
    N, H, W, Cin = x.shape
    Cout = w_mat.shape[1]
    return pl.pallas_call(
        _spade_conv1x1_kernel,
        out_shape=jax.ShapeDtypeStruct((N, H, W, Cout), jnp.float32),
        grid=(N,),
        in_specs=[
            _nhwc_spec(x.shape),
            _nhwc_spec(gb.shape),
            pl.BlockSpec((Cin, Cout), lambda n: (0, 0)),
        ],
        out_specs=pl.BlockSpec((1, H, W, Cout), lambda n: (n, 0, 0, 0)),
        compiler_params=pltpu.CompilerParams(dimension_semantics=("parallel",)),
    )(x, gb, w_mat.astype(jnp.bfloat16))


# --------------------- spectral norm / parameter glue -------------------------

def _l2normalize(v, eps=1e-12):
    return v / (jnp.linalg.norm(v) + eps)


def spectral_normalize(w, u, v):
    """One power iteration, exactly as spectral_norm._update_u_v at forward time."""
    height = w.shape[0]
    wm = w.reshape(height, -1)
    v_new = _l2normalize(wm.T @ u)
    u_new = _l2normalize(wm @ v_new)
    sigma = u_new @ (wm @ v_new)
    return w / sigma


def _init_conv(key, cout, cin, k, bias=True, scale=0.1):
    kw, kb = jax.random.split(key)
    w = scale * jax.random.normal(kw, (cout, cin, k, k), jnp.float32)   # OIHW
    b = scale * jax.random.normal(kb, (cout,), jnp.float32) if bias else None
    return w, b


def _init_sn(key, w):
    ku, kv = jax.random.split(key)
    height = w.shape[0]
    width = w.reshape(height, -1).shape[1]
    u = _l2normalize(jax.random.normal(ku, (height,), jnp.float32))
    v = _l2normalize(jax.random.normal(kv, (width,), jnp.float32))
    return u, v


def _init_spade(key, norm_nc, label_nc):
    k1, k2, k3 = jax.random.split(key, 3)
    return {
        "shared": _init_conv(k1, NHIDDEN, label_nc, 3),
        "gamma": _init_conv(k2, norm_nc, NHIDDEN, 3),
        "beta": _init_conv(k3, norm_nc, NHIDDEN, 3),
    }


def init_genblock_params(key, fin, fout, ic):
    fmiddle = min(fin, fout)
    k0, k1, k2, k3, k4, k5, k6, k7, k8 = jax.random.split(key, 9)
    w0, b0 = _init_conv(k0, fmiddle, fin, 3)
    u0, v0 = _init_sn(k1, w0)
    w1, b1 = _init_conv(k2, fout, fmiddle, 3)
    u1, v1 = _init_sn(k3, w1)
    params = {
        "learned_shortcut": fin != fout,
        "conv_0": {"w": w0, "b": b0, "u": u0, "v": v0},
        "conv_1": {"w": w1, "b": b1, "u": u1, "v": v1},
        "norm_0": _init_spade(k4, fin, ic),
        "norm_1": _init_spade(k5, fmiddle, ic),
    }
    if params["learned_shortcut"]:
        ws, _ = _init_conv(k6, fout, fin, 1, bias=False)
        us, vs = _init_sn(k7, ws)
        params["conv_s"] = {"w": ws, "u": us, "v": vs}
        params["norm_s"] = _init_spade(k8, fin, ic)
    return params


# ------------------------------ forward ---------------------------------------

def adaptive_avg_pool_nhwc(evo, out_hw):
    # TODO(synk): only the integer-ratio case of adaptive_avg_pool2d is implemented.
    N, eH, eW, C = evo.shape
    H, W = out_hw
    assert eH % H == 0 and eW % W == 0, "only integer-ratio adaptive pool supported"
    rh, rw = eH // H, eW // W
    return evo.reshape(N, H, rh, W, rw, C).mean(axis=(2, 4))


def spade_gamma_beta(evo_pooled, p):
    """SPADE conditioning branch: shared conv + ReLU, then gamma & beta convs
    merged into a single conv with 2*norm_nc output channels -> [gamma | beta]."""
    w_sh, b_sh = p["shared"]
    actv = conv3x3_reflect(evo_pooled, w_sh, b_sh, act="relu",
                           out_dtype=jnp.bfloat16)           # matmul input only
    w_g, b_g = p["gamma"]
    w_b, b_b = p["beta"]
    w_gb = jnp.concatenate([w_g, w_b], axis=0)               # (2*C, 64, 3, 3)
    b_gb = jnp.concatenate([b_g, b_b], axis=0)
    return conv3x3_reflect(actv, w_gb, b_gb, act="none", out_dtype=jnp.float32)


def genblock_forward(x_nchw, evo_nchw, params, double_conv=True):
    x = jnp.transpose(x_nchw, (0, 2, 3, 1)).astype(jnp.float32)      # NCHW -> NHWC
    evo = jnp.transpose(evo_nchw, (0, 2, 3, 1)).astype(jnp.float32)
    N, H, W, _ = x.shape
    evo_p = adaptive_avg_pool_nhwc(evo, (H, W))

    # shortcut: x_s = conv_s(norm_s(x, evo))  (IN + modulation + 1x1 conv fused)
    if params["learned_shortcut"]:
        gb_s = spade_gamma_beta(evo_p, params["norm_s"])
        p = params["conv_s"]
        w_s = spectral_normalize(p["w"], p["u"], p["v"])             # (fout, fin, 1, 1)
        x_s = spade_conv1x1(x, gb_s, w_s[:, :, 0, 0].T)              # (fin, fout)
    else:
        x_s = x

    # dx = conv_0(pad(leaky_relu(norm_0(x, evo))))  -- fully fused
    gb_0 = spade_gamma_beta(evo_p, params["norm_0"])
    p0 = params["conv_0"]
    w0 = spectral_normalize(p0["w"], p0["u"], p0["v"])

    if double_conv:
        dx = spade_conv3x3(x, gb_0, w0, p0["b"], residual=None, leaky=True)
        # dx = conv_1(pad(leaky_relu(norm_1(dx, evo)))) + x_s  -- residual fused
        gb_1 = spade_gamma_beta(evo_p, params["norm_1"])
        p1 = params["conv_1"]
        w1 = spectral_normalize(p1["w"], p1["u"], p1["v"])
        out = spade_conv3x3(dx, gb_1, w1, p1["b"], residual=x_s, leaky=True)
    else:
        out = spade_conv3x3(x, gb_0, w0, p0["b"], residual=x_s, leaky=True)

    return jnp.transpose(out, (0, 3, 1, 2))                          # back to NCHW


# ------------------------- pure-JAX reference ----------------------------------

def _ref_conv(x, w_oihw, b, k):
    w_hwio = jnp.transpose(w_oihw, (2, 3, 1, 0))
    pad = k // 2
    xp = (jnp.pad(x, ((0, 0), (pad, pad), (pad, pad), (0, 0)), mode="reflect")
          if pad else x)
    y = jax.lax.conv_general_dilated(
        xp, w_hwio, window_strides=(1, 1), padding="VALID",
        dimension_numbers=("NHWC", "HWIO", "NHWC"))
    if b is not None:
        y = y + b.reshape(1, 1, 1, -1)
    return y


def _ref_instance_norm(x):
    mean = jnp.mean(x, axis=(1, 2), keepdims=True)
    var = jnp.mean((x - mean) ** 2, axis=(1, 2), keepdims=True)
    return (x - mean) * jax.lax.rsqrt(var + IN_EPS)


def _ref_spade(x, evo_p, p):
    normalized = _ref_instance_norm(x)
    actv = jax.nn.relu(_ref_conv(evo_p, *p["shared"], 3))
    gamma = _ref_conv(actv, *p["gamma"], 3)
    beta = _ref_conv(actv, *p["beta"], 3)
    return normalized * (1.0 + gamma) + beta


def _leaky(x):
    return jnp.where(x >= 0.0, x, LEAKY_SLOPE * x)


def genblock_reference(x_nchw, evo_nchw, params, double_conv=True):
    x = jnp.transpose(x_nchw, (0, 2, 3, 1)).astype(jnp.float32)
    evo = jnp.transpose(evo_nchw, (0, 2, 3, 1)).astype(jnp.float32)
    N, H, W, _ = x.shape
    evo_p = adaptive_avg_pool_nhwc(evo, (H, W))
    if params["learned_shortcut"]:
        p = params["conv_s"]
        w_s = spectral_normalize(p["w"], p["u"], p["v"])
        x_s = _ref_conv(_ref_spade(x, evo_p, params["norm_s"]), w_s, None, 1)
    else:
        x_s = x
    p = params["conv_0"]
    dx = _ref_conv(_leaky(_ref_spade(x, evo_p, params["norm_0"])),
                   spectral_normalize(p["w"], p["u"], p["v"]), p["b"], 3)
    if double_conv:
        p = params["conv_1"]
        dx = _ref_conv(_leaky(_ref_spade(dx, evo_p, params["norm_1"])),
                       spectral_normalize(p["w"], p["u"], p["v"]), p["b"], 3)
    return jnp.transpose(x_s + dx, (0, 3, 1, 2))


# --------------------------------- main -----------------------------------------

if __name__ == "__main__":
    key = jax.random.PRNGKey(0)
    kx, ke, kp, kp2 = jax.random.split(key, 4)

    # learned_shortcut = True (fin != fout)
    N, fin, fout, ic, H, W = 2, 4, 8, 3, 16, 16
    x = jax.random.normal(kx, (N, fin, H, W), jnp.float32)      # NCHW like PyTorch
    evo = jax.random.normal(ke, (N, ic, 2 * H, 2 * W), jnp.float32)
    params = init_genblock_params(kp, fin, fout, ic)

    out = jax.block_until_ready(genblock_forward(x, evo, params))
    assert out.shape == (N, fout, H, W), out.shape
    assert bool(jnp.all(jnp.isfinite(out)))
    ref = jax.block_until_ready(genblock_reference(x, evo, params))
    np.testing.assert_allclose(np.asarray(out), np.asarray(ref), rtol=5e-2, atol=5e-2)

    # identity-shortcut path (fin == fout)
    params2 = init_genblock_params(kp2, fin, fin, ic)
    out2 = jax.block_until_ready(genblock_forward(x, evo, params2))
    assert out2.shape == (N, fin, H, W), out2.shape
    ref2 = jax.block_until_ready(genblock_reference(x, evo, params2))
    np.testing.assert_allclose(np.asarray(out2), np.asarray(ref2), rtol=5e-2, atol=5e-2)

    print("KERNEL_OK")
</pallas_src>

<mosaic_0001>
module attributes {stable_mosaic.version = 11 : i64} {
  func.func @_conv3x3_kernel(%arg0: i32, %arg1: memref<1x16x16x3xf32, #tpu.memory_space<vmem>>, %arg2: memref<3x3x3x64xbf16, #tpu.memory_space<vmem>>, %arg3: memref<1x64xf32, #tpu.memory_space<vmem>>, %arg4: memref<1x16x16x64xbf16, #tpu.memory_space<vmem>>, %arg5: memref<18x18x3xf32, #tpu.memory_space<vmem>>) attributes {dimension_semantics = [#tpu.dimension_semantics<parallel>], iteration_bounds = array<i64: 2>, scalar_prefetch = 0 : i64, scratch_operands = 1 : i64, tpu.core_type = #tpu.core_type<tc>, window_params = [{transform_indices = @transform_0, window_bounds = array<i64: 1, 16, 16, 3>}, {pipeline_mode = #tpu.pipeline_mode<synchronous>, transform_indices = @transform_1, window_bounds = array<i64: 3, 3, 3, 64>}, {pipeline_mode = #tpu.pipeline_mode<synchronous>, transform_indices = @transform_2, window_bounds = array<i64: 1, 64>}, {transform_indices = @transform_3, window_bounds = array<i64: 1, 16, 16, 64>}]} {
    %c0 = arith.constant 0 : index
    %c0_0 = arith.constant 0 : index
    %c0_1 = arith.constant 0 : index
    %c0_2 = arith.constant 0 : index
    %0 = vector.load %arg1[%c0, %c0_0, %c0_1, %c0_2] : memref<1x16x16x3xf32, #tpu.memory_space<vmem>>, vector<1x16x16x3xf32>
    %1 = vector.shape_cast %0 : vector<1x16x16x3xf32> to vector<16x16x3xf32>
    %c1 = arith.constant 1 : index
    %c1_3 = arith.constant 1 : index
    %c0_4 = arith.constant 0 : index
    %2 = vector.load %arg5[%c1, %c1_3, %c0_4] : memref<18x18x3xf32, #tpu.memory_space<vmem>>, vector<16x16x3xf32>
    tpu.vector_store %arg5[%c1, %c1_3, %c0_4], %1 {strides = array<i32>} : memref<18x18x3xf32, #tpu.memory_space<vmem>>, vector<16x16x3xf32>,
    %3 = vector.extract_strided_slice %1 {offsets = [1, 0, 0], sizes = [1, 16, 3], strides = [1, 1, 1]} : vector<16x16x3xf32> to vector<1x16x3xf32>
    %c0_5 = arith.constant 0 : index
    %c1_6 = arith.constant 1 : index
    %c0_7 = arith.constant 0 : index
    %4 = vector.load %arg5[%c0_5, %c1_6, %c0_7] : memref<18x18x3xf32, #tpu.memory_space<vmem>>, vector<1x16x3xf32>
    tpu.vector_store %arg5[%c0_5, %c1_6, %c0_7], %3 {strides = array<i32>} : memref<18x18x3xf32, #tpu.memory_space<vmem>>, vector<1x16x3xf32>,
    %5 = vector.extract_strided_slice %1 {offsets = [14, 0, 0], sizes = [1, 16, 3], strides = [1, 1, 1]} : vector<16x16x3xf32> to vector<1x16x3xf32>
    %c17 = arith.constant 17 : index
    %c1_8 = arith.constant 1 : index
    %c0_9 = arith.constant 0 : index
    %6 = vector.load %arg5[%c17, %c1_8, %c0_9] : memref<18x18x3xf32, #tpu.memory_space<vmem>>, vector<1x16x3xf32>
    tpu.vector_store %arg5[%c17, %c1_8, %c0_9], %5 {strides = array<i32>} : memref<18x18x3xf32, #tpu.memory_space<vmem>>, vector<1x16x3xf32>,
    %c0_10 = arith.constant 0 : index
    %c2 = arith.constant 2 : index
    %c0_11 = arith.constant 0 : index
    %7 = vector.load %arg5[%c0_10, %c2, %c0_11] : memref<18x18x3xf32, #tpu.memory_space<vmem>>, vector<18x1x3xf32>
    %c0_12 = arith.constant 0 : index
    %c0_13 = arith.constant 0 : index
    %c0_14 = arith.constant 0 : index
    %8 = vector.load %arg5[%c0_12, %c0_13, %c0_14] : memref<18x18x3xf32, #tpu.memory_space<vmem>>, vector<18x1x3xf32>
    tpu.vector_store %arg5[%c0_12, %c0_13, %c0_14], %7 {strides = array<i32>} : memref<18x18x3xf32, #tpu.memory_space<vmem>>, vector<18x1x3xf32>,
    %c0_15 = arith.constant 0 : index
    %c15 = arith.constant 15 : index
    %c0_16 = arith.constant 0 : index
    %9 = vector.load %arg5[%c0_15, %c15, %c0_16] : memref<18x18x3xf32, #tpu.memory_space<vmem>>, vector<18x1x3xf32>
    %c0_17 = arith.constant 0 : index
    %c17_18 = arith.constant 17 : index
    %c0_19 = arith.constant 0 : index
    %10 = vector.load %arg5[%c0_17, %c17_18, %c0_19] : memref<18x18x3xf32, #tpu.memory_space<vmem>>, vector<18x1x3xf32>
    tpu.vector_store %arg5[%c0_17, %c17_18, %c0_19], %9 {strides = array<i32>} : memref<18x18x3xf32, #tpu.memory_space<vmem>>, vector<18x1x3xf32>,
    %cst = arith.constant 0.000000e+00 : f32
    %11 = vector.broadcast %cst : f32 to vector<256x64xf32>
    %c0_20 = arith.constant 0 : index
    %c0_21 = arith.constant 0 : index
    %c0_22 = arith.constant 0 : index
    %12 = vector.load %arg5[%c0_20, %c0_21, %c0_22] : memref<18x18x3xf32, #tpu.memory_space<vmem>>, vector<16x16x3xf32>
    %13 = vector.shape_cast %12 : vector<16x16x3xf32> to vector<256x3xf32>
    %14 = arith.truncf %13 : vector<256x3xf32> to vector<256x3xbf16>
    %c0_23 = arith.constant 0 : index
    %c0_24 = arith.constant 0 : index
    %c0_25 = arith.constant 0 : index
    %c0_26 = arith.constant 0 : index
    %15 = vector.load %arg2[%c0_23, %c0_24, %c0_25, %c0_26] : memref<3x3x3x64xbf16, #tpu.memory_space<vmem>>, vector<1x1x3x64xbf16>
    %16 = vector.shape_cast %15 : vector<1x1x3x64xbf16> to vector<3x64xbf16>
    %cst_27 = arith.constant dense<0.000000e+00> : vector<256x64xf32>
    %17 = tpu.matmul %14, %16, %cst_27 {dimension_numbers = #tpu.dot_dimension_numbers<[1], [0], [0], [1], [0, 0, 1, 1], [], []>} : vector<256x3xbf16>, vector<3x64xbf16>, vector<256x64xf32> -> vector<256x64xf32>
    %18 = arith.addf %11, %17 : vector<256x64xf32>
    %c0_28 = arith.constant 0 : index
    %c1_29 = arith.constant 1 : index
    %c0_30 = arith.constant 0 : index
    %19 = vector.load %arg5[%c0_28, %c1_29, %c0_30] : memref<18x18x3xf32, #tpu.memory_space<vmem>>, vector<16x16x3xf32>
    %20 = vector.shape_cast %19 : vector<16x16x3xf32> to vector<256x3xf32>
    %21 = arith.truncf %20 : vector<256x3xf32> to vector<256x3xbf16>
    %c0_31 = arith.constant 0 : index
    %c1_32 = arith.constant 1 : index
    %c0_33 = arith.constant 0 : index
    %c0_34 = arith.constant 0 : index
    %22 = vector.load %arg2[%c0_31, %c1_32, %c0_33, %c0_34] : memref<3x3x3x64xbf16, #tpu.memory_space<vmem>>, vector<1x1x3x64xbf16>
    %23 = vector.shape_cast %22 : vector<1x1x3x64xbf16> to vector<3x64xbf16>
    %cst_35 = arith.constant dense<0.000000e+00> : vector<256x64xf32>
    %24 = tpu.matmul %21, %23, %cst_35 {dimension_numbers = #tpu.dot_dimension_numbers<[1], [0], [0], [1], [0, 0, 1, 1], [], []>} : vector<256x3xbf16>, vector<3x64xbf16>, vector<256x64xf32> -> vector<256x64xf32>
    %25 = arith.addf %18, %24 : vector<256x64xf32>
    %c0_36 = arith.constant 0 : index
    %c2_37 = arith.constant 2 : index
    %c0_38 = arith.constant 0 : index
    %26 = vector.load %arg5[%c0_36, %c2_37, %c0_38] : memref<18x18x3xf32, #tpu.memory_space<vmem>>, vector<16x16x3xf32>
    %27 = vector.shape_cast %26 : vector<16x16x3xf32> to vector<256x3xf32>
    %28 = arith.truncf %27 : vector<256x3xf32> to vector<256x3xbf16>
    %c0_39 = arith.constant 0 : index
    %c2_40 = arith.constant 2 : index
    %c0_41 = arith.constant 0 : index
    %c0_42 = arith.constant 0 : index
    %29 = vector.load %arg2[%c0_39, %c2_40, %c0_41, %c0_42] : memref<3x3x3x64xbf16, #tpu.memory_space<vmem>>, vector<1x1x3x64xbf16>
    %30 = vector.shape_cast %29 : vector<1x1x3x64xbf16> to vector<3x64xbf16>
    %cst_43 = arith.constant dense<0.000000e+00> : vector<256x64xf32>
    %31 = tpu.matmul %28, %30, %cst_43 {dimension_numbers = #tpu.dot_dimension_numbers<[1], [0], [0], [1], [0, 0, 1, 1], [], []>} : vector<256x3xbf16>, vector<3x64xbf16>, vector<256x64xf32> -> vector<256x64xf32>
    %32 = arith.addf %25, %31 : vector<256x64xf32>
    %c1_44 = arith.constant 1 : index
    %c0_45 = arith.constant 0 : index
    %c0_46 = arith.constant 0 : index
    %33 = vector.load %arg5[%c1_44, %c0_45, %c0_46] : memref<18x18x3xf32, #tpu.memory_space<vmem>>, vector<16x16x3xf32>
    %34 = vector.shape_cast %33 : vector<16x16x3xf32> to vector<256x3xf32>
    %35 = arith.truncf %34 : vector<256x3xf32> to vector<256x3xbf16>
    %c1_47 = arith.constant 1 : index
    %c0_48 = arith.constant 0 : index
    %c0_49 = arith.constant 0 : index
    %c0_50 = arith.constant 0 : index
    %36 = vector.load %arg2[%c1_47, %c0_48, %c0_49, %c0_50] : memref<3x3x3x64xbf16, #tpu.memory_space<vmem>>, vector<1x1x3x64xbf16>
    %37 = vector.shape_cast %36 : vector<1x1x3x64xbf16> to vector<3x64xbf16>
    %cst_51 = arith.constant dense<0.000000e+00> : vector<256x64xf32>
    %38 = tpu.matmul %35, %37, %cst_51 {dimension_numbers = #tpu.dot_dimension_numbers<[1], [0], [0], [1], [0, 0, 1, 1], [], []>} : vector<256x3xbf16>, vector<3x64xbf16>, vector<256x64xf32> -> vector<256x64xf32>
    %39 = arith.addf %32, %38 : vector<256x64xf32>
    %c1_52 = arith.constant 1 : index
    %c1_53 = arith.constant 1 : index
    %c0_54 = arith.constant 0 : index
    %40 = vector.load %arg5[%c1_52, %c1_53, %c0_54] : memref<18x18x3xf32, #tpu.memory_space<vmem>>, vector<16x16x3xf32>
    %41 = vector.shape_cast %40 : vector<16x16x3xf32> to vector<256x3xf32>
    %42 = arith.truncf %41 : vector<256x3xf32> to vector<256x3xbf16>
    %c1_55 = arith.constant 1 : index
    %c1_56 = arith.constant 1 : index
    %c0_57 = arith.constant 0 : index
    %c0_58 = arith.constant 0 : index
    %43 = vector.load %arg2[%c1_55, %c1_56, %c0_57, %c0_58] : memref<3x3x3x64xbf16, #tpu.memory_space<vmem>>, vector<1x1x3x64xbf16>
    %44 = vector.shape_cast %43 : vector<1x1x3x64xbf16> to vector<3x64xbf16>
    %cst_59 = arith.constant dense<0.000000e+00> : vector<256x64xf32>
    %45 = tpu.matmul %42, %44, %cst_59 {dimension_numbers = #tpu.dot_dimension_numbers<[1], [0], [0], [1], [0, 0, 1, 1], [], []>} : vector<256x3xbf16>, vector<3x64xbf16>, vector<256x64xf32> -> vector<256x64xf32>
    %46 = arith.addf %39, %45 : vector<256x64xf32>
    %c1_60 = arith.constant 1 : index
    %c2_61 = arith.constant 2 : index
    %c0_62 = arith.constant 0 : index
    %47 = vector.load %arg5[%c1_60, %c2_61, %c0_62] : memref<18x18x3xf32, #tpu.memory_space<vmem>>, vector<16x16x3xf32>
    %48 = vector.shape_cast %47 : vector<16x16x3xf32> to vector<256x3xf32>
    %49 = arith.truncf %48 : vector<256x3xf32> to vector<256x3xbf16>
    %c1_63 = arith.constant 1 : index
    %c2_64 = arith.constant 2 : index
    %c0_65 = arith.constant 0 : index
    %c0_66 = arith.constant 0 : index
    %50 = vector.load %arg2[%c1_63, %c2_64, %c0_65, %c0_66] : memref<3x3x3x64xbf16, #tpu.memory_space<vmem>>, vector<1x1x3x64xbf16>
    %51 = vector.shape_cast %50 : vector<1x1x3x64xbf16> to vector<3x64xbf16>
    %cst_67 = arith.constant dense<0.000000e+00> : vector<256x64xf32>
    %52 = tpu.matmul %49, %51, %cst_67 {dimension_numbers = #tpu.dot_dimension_numbers<[1], [0], [0], [1], [0, 0, 1, 1], [], []>} : vector<256x3xbf16>, vector<3x64xbf16>, vector<256x64xf32> -> vector<256x64xf32>
    %53 = arith.addf %46, %52 : vector<256x64xf32>
    %c2_68 = arith.constant 2 : index
    %c0_69 = arith.constant 0 : index
    %c0_70 = arith.constant 0 : index
    %54 = vector.load %arg5[%c2_68, %c0_69, %c0_70] : memref<18x18x3xf32, #tpu.memory_space<vmem>>, vector<16x16x3xf32>
    %55 = vector.shape_cast %54 : vector<16x16x3xf32> to vector<256x3xf32>
    %56 = arith.truncf %55 : vector<256x3xf32> to vector<256x3xbf16>
    %c2_71 = arith.constant 2 : index
    %c0_72 = arith.constant 0 : index
    %c0_73 = arith.constant 0 : index
    %c0_74 = arith.constant 0 : index
    %57 = vector.load %arg2[%c2_71, %c0_72, %c0_73, %c0_74] : memref<3x3x3x64xbf16, #tpu.memory_space<vmem>>, vector<1x1x3x64xbf16>
    %58 = vector.shape_cast %57 : vector<1x1x3x64xbf16> to vector<3x64xbf16>
    %cst_75 = arith.constant dense<0.000000e+00> : vector<256x64xf32>
    %59 = tpu.matmul %56, %58, %cst_75 {dimension_numbers = #tpu.dot_dimension_numbers<[1], [0], [0], [1], [0, 0, 1, 1], [], []>} : vector<256x3xbf16>, vector<3x64xbf16>, vector<256x64xf32> -> vector<256x64xf32>
    %60 = arith.addf %53, %59 : vector<256x64xf32>
    %c2_76 = arith.constant 2 : index
    %c1_77 = arith.constant 1 : index
    %c0_78 = arith.constant 0 : index
    %61 = vector.load %arg5[%c2_76, %c1_77, %c0_78] : memref<18x18x3xf32, #tpu.memory_space<vmem>>, vector<16x16x3xf32>
    %62 = vector.shape_cast %61 : vector<16x16x3xf32> to vector<256x3xf32>
    %63 = arith.truncf %62 : vector<256x3xf32> to vector<256x3xbf16>
    %c2_79 = arith.constant 2 : index
    %c1_80 = arith.constant 1 : index
    %c0_81 = arith.constant 0 : index
    %c0_82 = arith.constant 0 : index
    %64 = vector.load %arg2[%c2_79, %c1_80, %c0_81, %c0_82] : memref<3x3x3x64xbf16, #tpu.memory_space<vmem>>, vector<1x1x3x64xbf16>
    %65 = vector.shape_cast %64 : vector<1x1x3x64xbf16> to vector<3x64xbf16>
    %cst_83 = arith.constant dense<0.000000e+00> : vector<256x64xf32>
    %66 = tpu.matmul %63, %65, %cst_83 {dimension_numbers = #tpu.dot_dimension_numbers<[1], [0], [0], [1], [0, 0, 1, 1], [], []>} : vector<256x3xbf16>, vector<3x64xbf16>, vector<256x64xf32> -> vector<256x64xf32>
    %67 = arith.addf %60, %66 : vector<256x64xf32>
    %c2_84 = arith.constant 2 : index
    %c2_85 = arith.constant 2 : index
    %c0_86 = arith.constant 0 : index
    %68 = vector.load %arg5[%c2_84, %c2_85, %c0_86] : memref<18x18x3xf32, #tpu.memory_space<vmem>>, vector<16x16x3xf32>
    %69 = vector.shape_cast %68 : vector<16x16x3xf32> to vector<256x3xf32>
    %70 = arith.truncf %69 : vector<256x3xf32> to vector<256x3xbf16>
    %c2_87 = arith.constant 2 : index
    %c2_88 = arith.constant 2 : index
    %c0_89 = arith.constant 0 : index
    %c0_90 = arith.constant 0 : index
    %71 = vector.load %arg2[%c2_87, %c2_88, %c0_89, %c0_90] : memref<3x3x3x64xbf16, #tpu.memory_space<vmem>>, vector<1x1x3x64xbf16>
    %72 = vector.shape_cast %71 : vector<1x1x3x64xbf16> to vector<3x64xbf16>
    %cst_91 = arith.constant dense<0.000000e+00> : vector<256x64xf32>
    %73 = tpu.matmul %70, %72, %cst_91 {dimension_numbers = #tpu.dot_dimension_numbers<[1], [0], [0], [1], [0, 0, 1, 1], [], []>} : vector<256x3xbf16>, vector<3x64xbf16>, vector<256x64xf32> -> vector<256x64xf32>
    %74 = arith.addf %67, %73 : vector<256x64xf32>
    %c0_92 = arith.constant 0 : index
    %c0_93 = arith.constant 0 : index
    %75 = vector.load %arg3[%c0_92, %c0_93] : memref<1x64xf32, #tpu.memory_space<vmem>>, vector<1x64xf32>
    %76 = vector.broadcast %75 : vector<1x64xf32> to vector<256x64xf32>
    %77 = arith.addf %74, %76 : vector<256x64xf32>
    %cst_94 = arith.constant 0.000000e+00 : f32
    %78 = vector.broadcast %cst_94 : f32 to vector<256x64xf32>
    %79 = arith.maximumf %77, %78 : vector<256x64xf32>
    %80 = vector.shape_cast %79 : vector<256x64xf32> to vector<1x16x16x64xf32>
    %81 = arith.truncf %80 : vector<1x16x16x64xf32> to vector<1x16x16x64xbf16>
    %c0_95 = arith.constant 0 : index
    %c0_96 = arith.constant 0 : index
    %c0_97 = arith.constant 0 : index
    %c0_98 = arith.constant 0 : index
    %82 = vector.load %arg4[%c0_95, %c0_96, %c0_97, %c0_98] : memref<1x16x16x64xbf16, #tpu.memory_space<vmem>>, vector<1x16x16x64xbf16>
    tpu.vector_store %arg4[%c0_95, %c0_96, %c0_97, %c0_98], %81 {strides = array<i32>} : memref<1x16x16x64xbf16, #tpu.memory_space<vmem>>, vector<1x16x16x64xbf16>,
    return
  }
  func.func @transform_0(%arg0: i32) -> (i32, i32, i32, i32) {
    %c0_i32 = arith.constant 0 : i32
    %c0_i32_0 = arith.constant 0 : i32
    %c0_i32_1 = arith.constant 0 : i32
    %c0_i32_2 = arith.constant 0 : i32
    return %arg0, %c0_i32, %c0_i32_0, %c0_i32_1 : i32, i32, i32, i32
  }
  func.func @transform_1(%arg0: i32) -> (i32, i32, i32, i32) {
    %c0_i32 = arith.constant 0 : i32
    %c0_i32_0 = arith.constant 0 : i32
    %c0_i32_1 = arith.constant 0 : i32
    %c0_i32_2 = arith.constant 0 : i32
    %c0_i32_3 = arith.constant 0 : i32
    return %c0_i32, %c0_i32_0, %c0_i32_1, %c0_i32_2 : i32, i32, i32, i32
  }
  func.func @transform_2(%arg0: i32) -> (i32, i32) {
    %c0_i32 = arith.constant 0 : i32
    %c0_i32_0 = arith.constant 0 : i32
    %c0_i32_1 = arith.constant 0 : i32
    return %c0_i32, %c0_i32_0 : i32, i32
  }
  func.func @transform_3(%arg0: i32) -> (i32, i32, i32, i32) {
    %c0_i32 = arith.constant 0 : i32
    %c0_i32_0 = arith.constant 0 : i32
    %c0_i32_1 = arith.constant 0 : i32
    %c0_i32_2 = arith.constant 0 : i32
    return %arg0, %c0_i32, %c0_i32_0, %c0_i32_1 : i32, i32, i32, i32
  }
}

</mosaic_0001>

<bundles_post_ra>
// kernel: tpu_custom_call.1
= control target key start
LH: loop header
LB: loop body
LE: loop exit
PB: predicated region body
PF: predicated region fallthrough
CT: control target
= control target key end

     0   :  { %8 = vsyncpa [#allocation4], 0  ;;  %s5060_s0 = inlined_call_operand.vmem [shape: f32[2,16,16,3], index: 0, kind: input, shape index: {}]   ;;  %s5061_s1 = inlined_call_operand.vmem [shape: bf16[3,3,3,64], index: 1, kind: input, shape index: {}]   ;;  %s5062_s2 = inlined_call_operand.vmem [shape: f32[1,64], index: 2, kind: input, shape index: {}]   ;;  %s5063_s3 = inlined_call_operand.hbm [shape: bf16[2,16,16,64], index: 3, kind: output, shape index: {}]  }
   0x1   :  { %10 = vsyncpa [#allocation4 + $0x1], 0  ;;  %s4286_s12 = smov 0   ;;  %s4288_s13 = smov 0  }
   0x2   :  { %s4290_s14 = smov 0   ;;  %s4292_s15 = smov 0  }
   0x3 LB: > { %s4307_s16 = sadd.s32 4294967295, %s4260_s15   ;;  %s3208_s17 = sadd.s32 4294967294, %s4260_s15   ;;  %s4260_s15 = sphi %s4292_s15, %s5069_s15   ;;  %s4256_s14 = sphi %s4290_s14, %s5068_s14   ;;  %s4252_s13 = sphi %s4288_s13, %s5067_s13   ;;  %s4248_s12 = sphi %s4286_s12, %s5066_s12  }
   0x4   : > { %s4311_s18 = sadd.s32 1, %s4260_s15   ;;  %s91_s19 = sadd.s32 1, %s4256_s14 }
   0x5   : > { %s88_s20 = ssub.s32 %s4260_s15, %s4311_s18  ;;  %p101_p0 = scmp.ne.s32.totalorder %s4256_s14, %s4252_s13 }
   0x6   : > { %p89_p1 = scmp.eq.s32.totalorder %s88_s20, 0  ;;  %p102_p2 = scmp.eq.s32.totalorder %s4307_s16, 1 }
   0x7   : > { %p107_p3 = scmp.ne.s32.totalorder %s4252_s13, %s4248_s12  ;;  %p108_p4 = scmp.eq.s32.totalorder %s3208_s17, 1 }
   0x8   : > { %s4322_s21 = scalar_select %p89_p1, %s4256_s14, %s91_s19  }
   0x9   : > { %p4324_p5 = por %p102_p2, %p101_p0  ;;  %p4328_p6 = por %p108_p4, %p107_p3 }
   0xa   : > { %p3211_p7 = scmp.ge.s32.totalorder %s4260_s15, 1  ;;  %p140_p8 = scmp.lt.s32.totalorder %s4260_s15, 3 }
   0xc   : > { %p141_p9 = pnand %p3211_p7, %p140_p8 }
   0xd   : > { %v3215_v0 = vld [vmem:[%s5061_s1 + $0x2] sm:$0x3] (!%p141_p9)  ;;  %vm461_vm0 = vcmask (!%p141_p9), 1040384   ;;  %vm462_vm1 = vcmask (!%p141_p9), 1041408   ;;  %p164_p10 = scmp.lt.s32.totalorder (!%p141_p9), %s4307_s16, 1  ;;  %v4262_v1 = vmov (!%p141_p9), 65535  }
   0xe   : > { %144 = sbr.rel (%p141_p9) target bundleno = 560 (0x230), region = 32  ;;  %v463_v2 = vsel (!%p141_p9), %vm461_vm0, 4294967295, %v4262_v1  ;;  %v3282_v3 = vld [vmem:[%s5061_s1 + $0x8] sm:$0x3] (!%p141_p9)  ;;  %v362_v4 = vld [vmem:[%s5061_s1] sm:$0x3] (!%p141_p9) }
   0xf   : > { %v4344_v5 = vsel (!%p141_p9), %vm462_vm1, %v463_v2, 0  ;;  %v3299_v6 = vld [vmem:[%s5061_s1 + $0xa] sm:$0x3] (!%p141_p9)  ;;  %vm203_vm2 = vcmask (!%p141_p9), 23552   ;;  %v3316_v29 = vld [vmem:[%s5061_s1 + $0xc] sm:$0x3] (!%p141_p9) }
  0x10   : > { %v466_v7 = vand.u32 (!%p141_p9), %v3215_v0, %v4344_v5  ;;  %v4352_v8 = vand.u32 (!%p141_p9), %v3282_v3, %v4344_v5  ;;  %v4355_v9 = vand.u32 (!%p141_p9), %v4344_v5, %v362_v4  ;;  %v4358_v10 = vand.u32 (!%p141_p9), %v3299_v6, %v4344_v5  ;;  %v3248_v36 = vld [vmem:[%s5061_s1 + $0x4] sm:$0x3] (!%p141_p9)  ;;  %s161_s29 = sand.u32 (!%p141_p9), 1, %s4252_s13   ;;  %s3438_s7 = sshll.u32 (!%p141_p9), %s4307_s16, 11 }
  0x11   : > { %v4431_v49 = vand.u32 (!%p141_p9), %v3316_v29, %v4344_v5  ;;  %vm259_vm3 = vcmask (!%p141_p9), 16384   ;;  %v4436_v50 = vand.u32 (!%p141_p9), %v3248_v36, %v4344_v5  ;;  %s3212_s5 = sshll.u32 (!%p141_p9), %s161_s29, 7  ;;  %vm3099_vm4 = vcmask (!%p141_p9), 519168   ;;  %s5007_s11 = scalar_lea.hbm (!%p141_p9), %s5063_s3, %s3438_s7 }
  0x12   : > { %3592 = vmatprep.subr.bf16.mxu1 (!%p141_p9), %v466_v7  ;;  %3728 = vmatprep.subr.bf16.mxu0 (!%p141_p9), %v4352_v8  ;;  %s4263_s19 = smov (!%p141_p9), [#allocation3]  }
  0x13   : > { %3593 = vmatpush3.bf16.msra.mxu1 (!%p141_p9), %v466_v7  ;;  %3729 = vmatpush3.bf16.msra.mxu0 (!%p141_p9), %v4352_v8  ;;  %s4202_s20 = sshll.u32 (!%p141_p9), %s4263_s19, 4  ;;  %s4203_s20 = int_to_ptr.vmem [resolvable:$false] %s4202_s20 }
  0x14   : > { %3626 = vmatprep.subr.bf16.mxu1 (!%p141_p9), %v4355_v9  ;;  %3762 = vmatprep.subr.bf16.mxu0 (!%p141_p9), %v4358_v10  ;;  %s4204_s24 = scalar_lea.vmem (!%p141_p9), %s4203_s20, 4096 }
  0x15   : > { %s165_s30 = scalar_select %p164_p10, %s4307_s16, 1 }
  0x16   : > { %s5019_s16 = scalar_lea.sflag [#allocation4], %s161_s29 }
  0x17   : > { %s3405_s6 = sshll.u32 %s165_s30, 8 }
  0x18   : > { %s4364_s9 = scalar_lea.vmem %s5060_s0, %s3405_s6  ;;  %s4908_s6 = scalar_lea.vmem [#allocation3], %s3212_s5 }
  0x19   : > { %v172_v11 = vld [vmem:[%s4364_s9 + $0x10] sm:$0xff]  ;;  %v173_v12 = vld [vmem:[%s4364_s9 + $0x18] sm:$0xff]  ;;  %v170_v13 = vld [vmem:[%s4364_s9] sm:$0xff]  ;;  %s3146_s8 = sshll.u32 %s4908_s6, 4  ;;  %s5009_s8 = int_to_ptr.vmem [resolvable:$true] %s3146_s8 }
  0x1a   : > { %206 = vst.msk [vmem:[#allocation2 + $0x31] sm:$0xff] %vm203_vm2, %v172_v11  ;;  %207 = vst.msk [vmem:[#allocation2 + $0x39] sm:$0xff] %vm203_vm2, %v173_v12  ;;  %v171_v14 = vld [vmem:[%s4364_s9 + $0x8] sm:$0xff]  ;;  %v174_v15 = vld [vmem:[%s4364_s9 + $0x20] sm:$0xff]  ;;  %s4198_s17 = scalar_lea.vmem %s5009_s8, 2048  ;;  %p4205_p0 = scmp.lt.s32.totalorder %s5009_s8, %s4203_s20 }
  0x1b   : > { %236 = vst.msk [vmem:[#allocation2 + $0x1] sm:$0xff] %vm203_vm2, %v172_v11  ;;  %237 = vst.msk [vmem:[#allocation2 + $0x9] sm:$0xff] %vm203_vm2, %v173_v12  ;;  %v175_v16 = vld [vmem:[%s4364_s9 + $0x28] sm:$0xff]  ;;  %v176_v17 = vld [vmem:[%s4364_s9 + $0x30] sm:$0xff]  ;;  %p4199_p11 = scmp.ne.s32.totalorder %s5009_s8, %s4198_s17  ;;  %p4206_p1 = scmp.lt.s32.totalorder %s4204_s24, %s4198_s17 }
  0x1c   : > { %204 = vst.msk [vmem:[#allocation2 + $0x19] sm:$0xff] %vm203_vm2, %v170_v13  ;;  %205 = vst.msk [vmem:[#allocation2 + $0x21] sm:$0xff] %vm203_vm2, %v171_v14  ;;  %v177_v18 = vld [vmem:[%s4364_s9 + $0x38] sm:$0xff]  ;;  %v178_v19 = vld [vmem:[%s4364_s9 + $0x40] sm:$0xff] }
  0x1d   : > { %208 = vst.msk [vmem:[#allocation2 + $0x49] sm:$0xff] %vm203_vm2, %v174_v15  ;;  %209 = vst.msk [vmem:[#allocation2 + $0x51] sm:$0xff] %vm203_vm2, %v175_v16  ;;  %v179_v20 = vld [vmem:[%s4364_s9 + $0x48] sm:$0xff]  ;;  %v180_v21 = vld [vmem:[%s4364_s9 + $0x50] sm:$0xff]  ;;  %p4200_p12 = pnand %p4199_p11, %p4324_p5  ;;  %p4207_p2 = por %p4206_p1, %p4205_p0 }
  0x1e   : > { %210 = vst.msk [vmem:[#allocation2 + $0x61] sm:$0xff] %vm203_vm2, %v176_v17  ;;  %211 = vst.msk [vmem:[#allocation2 + $0x69] sm:$0xff] %vm203_vm2, %v177_v18  ;;  %v181_v22 = vld [vmem:[%s4364_s9 + $0x58] sm:$0xff]  ;;  %v182_v23 = vld [vmem:[%s4364_s9 + $0x60] sm:$0xff] }
  0x1f   : > { %212 = vst.msk [vmem:[#allocation2 + $0x79] sm:$0xff] %vm203_vm2, %v178_v19  ;;  %213 = vst.msk [vmem:[#allocation2 + $0x81] sm:$0xff] %vm203_vm2, %v179_v20  ;;  %v183_v24 = vld [vmem:[%s4364_s9 + $0x68] sm:$0xff]  ;;  %v184_v25 = vld [vmem:[%s4364_s9 + $0x70] sm:$0xff]  ;;  %p4201_p13 = pneg %p4200_p12 }
  0x20   : > { %214 = vst.msk [vmem:[#allocation2 + $0x91] sm:$0xff] %vm203_vm2, %v180_v21  ;;  %215 = vst.msk [vmem:[#allocation2 + $0x99] sm:$0xff] %vm203_vm2, %v181_v22  ;;  %v185_v26 = vld [vmem:[%s4364_s9 + $0x78] sm:$0xff]  ;;  %v186_v27 = vld [vmem:[%s4364_s9 + $0x80] sm:$0xff] }
  0x21   : > { %216 = vst.msk [vmem:[#allocation2 + $0xa9] sm:$0xff] %vm203_vm2, %v182_v23  ;;  %217 = vst.msk [vmem:[#allocation2 + $0xb1] sm:$0xff] %vm203_vm2, %v183_v24  ;;  %v187_v28 = vld [vmem:[%s4364_s9 + $0x88] sm:$0xff]  ;;  %v188_v30 = vld [vmem:[%s4364_s9 + $0x90] sm:$0xff]  ;;  %p4208_p3 = pnand %p4207_p2, %p4201_p13 }
  0x22   : > { %218 = vst.msk [vmem:[#allocation2 + $0xc1] sm:$0xff] %vm203_vm2, %v184_v25  ;;  %219 = vst.msk [vmem:[#allocation2 + $0xc9] sm:$0xff] %vm203_vm2, %v185_v26  ;;  %v189_v31 = vld [vmem:[%s4364_s9 + $0x98] sm:$0xff]  ;;  %v190_v32 = vld [vmem:[%s4364_s9 + $0xa0] sm:$0xff] }
  0x23   : > { %220 = vst.msk [vmem:[#allocation2 + $0xd9] sm:$0xff] %vm203_vm2, %v186_v27  ;;  %221 = vst.msk [vmem:[#allocation2 + $0xe1] sm:$0xff] %vm203_vm2, %v187_v28  ;;  %v191_v33 = vld [vmem:[%s4364_s9 + $0xa8] sm:$0xff]  ;;  %v192_v34 = vld [vmem:[%s4364_s9 + $0xb0] sm:$0xff] }
  0x24   : > { %222 = vst.msk [vmem:[#allocation2 + $0xf1] sm:$0xff] %vm203_vm2, %v188_v30  ;;  %223 = vst.msk [vmem:[#allocation2 + $0xf9] sm:$0xff] %vm203_vm2, %v189_v31  ;;  %v193_v35 = vld [vmem:[%s4364_s9 + $0xb8] sm:$0xff]  ;;  %v363_v37 = vld [vmem:[#allocation2 + $0x1] sm:$0xff] }
  0x25   : > { %224 = vst.msk [vmem:[#allocation2 + $0x109] sm:$0xff] %vm203_vm2, %v190_v32  ;;  %v364_v38 = vld [vmem:[#allocation2 + $0x9] sm:$0xff]  ;;  %v1429_v39 = vld [vmem:[#allocation2 + $0x19] sm:$0xff]  ;;  %225 = vst.msk [vmem:[#allocation2 + $0x111] sm:$0xff] %vm203_vm2, %v191_v33 }
  0x26   : > { %226 = vst.msk [vmem:[#allocation2 + $0x121] sm:$0xff] %vm203_vm2, %v192_v34  ;;  %227 = vst.msk [vmem:[#allocation2 + $0x129] sm:$0xff] %vm203_vm2, %v193_v35  ;;  %v395_v40 = vpack.c.bf16 %v364_v38, %v363_v37  ;;  %v1430_v41 = vld [vmem:[#allocation2 + $0x21] sm:$0xff]  ;;  %v1431_v42 = vld [vmem:[#allocation2 + $0x31] sm:$0xff] }
  0x27   : > { %v1432_v43 = vld [vmem:[#allocation2 + $0x39] sm:$0xff]  ;;  %v1461_v44 = vpack.c.bf16 %v1430_v41, %v1429_v39  ;;  %v1433_v46 = vld [vmem:[#allocation2 + $0x49] sm:$0xff]  ;;  %v1434_v47 = vld [vmem:[#allocation2 + $0x51] sm:$0xff] }
  0x28   : > { %v4425_v45 = vpack.c.bf16 %v1432_v43, %v1431_v42  ;;  %3594 = vmatprep.mubr.msk.bf16.mxu1 %vm203_vm2, %v395_v40  ;;  %v4428_v48 = vpack.c.bf16 %v1434_v47, %v1433_v46  ;;  %v1435_v51 = vld [vmem:[#allocation2 + $0x61] sm:$0xff]  ;;  %v1436_v52 = vld [vmem:[#allocation2 + $0x69] sm:$0xff]  ;;  %v1437_v54 = vld [vmem:[#allocation2 + $0x79] sm:$0xff] }
  0x29   : > { %3730 = vmatprep.mubr.msk.bf16.mxu0 %vm203_vm2, %v1461_v44  ;;  %3595 = vmatmul.mubr.msk.bf16.vlgmr.msra.gmra.mrb[0].mxu1 %vm203_vm2, %v1461_v44  ;;  %v279_v53 = vld [vmem:[#allocation2 + $0x27] sm:$0x1]  ;;  %v280_v56 = vld [vmem:[#allocation2 + $0x3f] sm:$0x1]  ;;  %v281_v57 = vld [vmem:[#allocation2 + $0x57] sm:$0x1]  ;;  %v4450_v58 = vpack.c.bf16 %v1436_v52, %v1435_v51 }
  0x2a   : > { %3627 = vmatpush3.bf16.msra.mxu1 %v4355_v9  ;;  %3731 = vmatmul.mubr.msk.bf16.vlgmr.msra.gmra.mrb[0].mxu0 %vm203_vm2, %v4425_v45  ;;  %v1438_v55 = vld [vmem:[#allocation2 + $0x81] sm:$0xff]  ;;  %297 = vst.msk [vmem:[#allocation2 + $0x29] sm:$0x1] %vm259_vm3, %v279_v53  ;;  %298 = vst.msk [vmem:[#allocation2 + $0x41] sm:$0x1] %vm259_vm3, %v280_v56  ;;  %v1439_v1 = vld [vmem:[#allocation2 + $0x91] sm:$0xff] }
  0x2b   : > { %3763 = vmatpush3.bf16.msra.mxu0 %v4358_v10  ;;  %3598 = vmatprep.mubr.msk.bf16.mxu1 %vm203_vm2, %v4425_v45  ;;  %299 = vst.msk [vmem:[#allocation2 + $0x59] sm:$0x1] %vm259_vm3, %v281_v57  ;;  %v4453_v59 = vpack.c.bf16 %v1438_v55, %v1437_v54  ;;  %v282_v60 = vld [vmem:[#allocation2 + $0x6f] sm:$0x1]  ;;  %v283_v61 = vld [vmem:[#allocation2 + $0x87] sm:$0x1] }
  0x2c   : > { %3734 = vmatprep.mubr.msk.bf16.mxu0 %vm203_vm2, %v4428_v48  ;;  %3796 = vmatprep.subr.bf16.mxu0 %v4431_v49  ;;  %300 = vst.msk [vmem:[#allocation2 + $0x71] sm:$0x1] %vm259_vm3, %v282_v60  ;;  %301 = vst.msk [vmem:[#allocation2 + $0x89] sm:$0x1] %vm259_vm3, %v283_v61  ;;  %v194_v62 = vld [vmem:[%s4364_s9 + $0xc0] sm:$0xff]  ;;  %v195_v63 = vld [vmem:[%s4364_s9 + $0xc8] sm:$0xff] }
  0x2d   : > { %3660 = vmatprep.subr.bf16.mxu1 %v4436_v50  ;;  %v284_v0 = vld [vmem:[#allocation2 + $0x9f] sm:$0x1]  ;;  %228 = vst.msk [vmem:[#allocation2 + $0x139] sm:$0xff] %vm203_vm2, %v194_v62  ;;  %229 = vst.msk [vmem:[#allocation2 + $0x141] sm:$0xff] %vm203_vm2, %v195_v63  ;;  %v196_v2 = vld [vmem:[%s4364_s9 + $0xd0] sm:$0xff] }
  0x2e   : > { %302 = vst.msk [vmem:[#allocation2 + $0xa1] sm:$0x1] %vm259_vm3, %v284_v0  ;;  %v197_v3 = vld [vmem:[%s4364_s9 + $0xd8] sm:$0xff]  ;;  %v1441_v6 = vld [vmem:[#allocation2 + $0xa9] sm:$0xff]  ;;  %v285_v7 = vld [vmem:[#allocation2 + $0xb7] sm:$0x1] }
  0x2f   : > { %v1440_v4 = vld [vmem:[#allocation2 + $0x99] sm:$0xff]  ;;  %230 = vst.msk [vmem:[#allocation2 + $0x151] sm:$0xff] %vm203_vm2, %v196_v2  ;;  %231 = vst.msk [vmem:[#allocation2 + $0x159] sm:$0xff] %vm203_vm2, %v197_v3  ;;  %v1442_v9 = vld [vmem:[#allocation2 + $0xb1] sm:$0xff] }
  0x30   : > { %303 = vst.msk [vmem:[#allocation2 + $0xb9] sm:$0x1] %vm259_vm3, %v285_v7  ;;  %v198_v10 = vld [vmem:[%s4364_s9 + $0xe0] sm:$0xff]  ;;  %v199_v11 = vld [vmem:[%s4364_s9 + $0xe8] sm:$0xff]  ;;  %v4481_v13 = vpack.c.bf16 %v1440_v4, %v1439_v1  ;;  %v4484_v16 = vpack.c.bf16 %v1442_v9, %v1441_v6  ;;  %v242_v17 = vld [vmem:[#allocation2 + $0x1a] sm:$0x1] }
  0x31   : > { %3599 = vmatmul.mubr.msk.bf16.gmra.mrb[4].mxu1 %vm203_vm2, %v4428_v48  ;;  %232 = vst.msk [vmem:[#allocation2 + $0x169] sm:$0xff] %vm203_vm2, %v198_v10  ;;  %233 = vst.msk [vmem:[#allocation2 + $0x171] sm:$0xff] %vm203_vm2, %v199_v11  ;;  %v286_v12 = vld [vmem:[#allocation2 + $0xcf] sm:$0x1]  ;;  %v241_v14 = vld [vmem:[#allocation2 + $0x2] sm:$0x1] }
  0x32   : > { %3735 = vmatmul.mubr.msk.bf16.gmra.mrb[4].mxu0 %vm203_vm2, %v4450_v58  ;;  %3602 = vmatprep.mubr.msk.bf16.mxu1 %vm203_vm2, %v4450_v58  ;;  %239 = vst.msk [vmem:[#allocation2 + $0x199] sm:$0xff] %vm203_vm2, %v198_v10  ;;  %240 = vst.msk [vmem:[#allocation2 + $0x1a1] sm:$0xff] %vm203_vm2, %v199_v11  ;;  %v287_v15 = vld [vmem:[#allocation2 + $0xe7] sm:$0x1]  ;;  %v288_v18 = vld [vmem:[#allocation2 + $0xff] sm:$0x1] }
  0x33   : > { %3738 = vmatprep.mubr.msk.bf16.mxu0 %vm203_vm2, %v4453_v59  ;;  %304 = vst.msk [vmem:[#allocation2 + $0xd1] sm:$0x1] %vm259_vm3, %v286_v12  ;;  %260 = vst.msk [vmem:[#allocation2] sm:$0x1] %vm259_vm3, %v241_v14  ;;  %v1443_v19 = vld [vmem:[#allocation2 + $0xc1] sm:$0xff]  ;;  %v1444_v20 = vld [vmem:[#allocation2 + $0xc9] sm:$0xff] }
  0x34   : > { %305 = vst.msk [vmem:[#allocation2 + $0xe9] sm:$0x1] %vm259_vm3, %v287_v15  ;;  %261 = vst.msk [vmem:[#allocation2 + $0x18] sm:$0x1] %vm259_vm3, %v242_v17  ;;  %v243_v21 = vld [vmem:[#allocation2 + $0x32] sm:$0x1]  ;;  %v4500_v26 = vpack.c.bf16 %v1444_v20, %v1443_v19 }
  0x35   : > { %306 = vst.msk [vmem:[#allocation2 + $0x101] sm:$0x1] %vm259_vm3, %v288_v18  ;;  %v1723_v22 = vld [vmem:[#allocation2 + $0x1a] sm:$0xff]  ;;  %v1724_v23 = vld [vmem:[#allocation2 + $0x22] sm:$0xff]  ;;  %262 = vst.msk [vmem:[#allocation2 + $0x30] sm:$0x1] %vm259_vm3, %v243_v21 }
  0x36   : > { %v289_v24 = vld [vmem:[#allocation2 + $0x117] sm:$0x1]  ;;  %v244_v25 = vld [vmem:[#allocation2 + $0x4a] sm:$0x1]  ;;  %v4503_v27 = vpack.c.bf16 %v1724_v23, %v1723_v22  ;;  %v290_v28 = vld [vmem:[#allocation2 + $0x12f] sm:$0x1] }
  0x37   : > { %307 = vst.msk [vmem:[#allocation2 + $0x119] sm:$0x1] %vm259_vm3, %v289_v24  ;;  %263 = vst.msk [vmem:[#allocation2 + $0x48] sm:$0x1] %vm259_vm3, %v244_v25  ;;  %v381_v29 = vld [vmem:[#allocation2 + $0xd9] sm:$0xff]  ;;  %v382_v31 = vld [vmem:[#allocation2 + $0xe1] sm:$0xff] }
  0x38   : > { %308 = vst.msk [vmem:[#allocation2 + $0x131] sm:$0x1] %vm259_vm3, %v290_v28  ;;  %v245_v30 = vld [vmem:[#allocation2 + $0x62] sm:$0x1]  ;;  %v291_v32 = vld [vmem:[#allocation2 + $0x147] sm:$0x1]  ;;  %v4519_v43 = vpack.c.bf16 %v382_v31, %v381_v29 }
  0x39   : > { %3603 = vmatmul.mubr.msk.bf16.gmra.mrb[8].mxu1 %vm203_vm2, %v4453_v59  ;;  %264 = vst.msk [vmem:[#allocation2 + $0x60] sm:$0x1] %vm259_vm3, %v245_v30  ;;  %v246_v33 = vld [vmem:[#allocation2 + $0x7a] sm:$0x1]  ;;  %v1725_v34 = vld [vmem:[#allocation2 + $0x32] sm:$0xff]  ;;  %v1727_v40 = vld [vmem:[#allocation2 + $0x4a] sm:$0xff] }
  0x3a   : > { %3739 = vmatmul.mubr.msk.bf16.gmra.mrb[8].mxu0 %vm203_vm2, %v4481_v13  ;;  %3606 = vmatprep.mubr.msk.bf16.mxu1 %vm203_vm2, %v4481_v13  ;;  %v383_v35 = vld [vmem:[#allocation2 + $0xf1] sm:$0xff]  ;;  %309 = vst.msk [vmem:[#allocation2 + $0x149] sm:$0x1] %vm259_vm3, %v291_v32  ;;  %265 = vst.msk [vmem:[#allocation2 + $0x78] sm:$0x1] %vm259_vm3, %v246_v33  ;;  %v1726_v37 = vld [vmem:[#allocation2 + $0x3a] sm:$0xff] }
  0x3b   : > { %3742 = vmatprep.mubr.msk.bf16.mxu0 %vm203_vm2, %v4484_v16  ;;  %v292_v36 = vld [vmem:[#allocation2 + $0x15f] sm:$0x1]  ;;  %v247_v39 = vld [vmem:[#allocation2 + $0x92] sm:$0x1]  ;;  %v293_v42 = vld [vmem:[#allocation2 + $0x177] sm:$0x1]  ;;  %v4525_v47 = vpack.c.bf16 %v1726_v37, %v1725_v34 }
  0x3c   : > { %v384_v38 = vld [vmem:[#allocation2 + $0xf9] sm:$0xff]  ;;  %310 = vst.msk [vmem:[#allocation2 + $0x161] sm:$0x1] %vm259_vm3, %v292_v36  ;;  %266 = vst.msk [vmem:[#allocation2 + $0x90] sm:$0x1] %vm259_vm3, %v247_v39  ;;  %v200_v52 = vld [vmem:[%s4364_s9 + $0xf0] sm:$0xff] }
  0x3d   : > { %v1728_v41 = vld [vmem:[#allocation2 + $0x52] sm:$0xff]  ;;  %311 = vst.msk [vmem:[#allocation2 + $0x179] sm:$0x1] %vm259_vm3, %v293_v42  ;;  %v248_v44 = vld [vmem:[#allocation2 + $0xaa] sm:$0x1]  ;;  %v4527_v51 = vpack.c.bf16 %v384_v38, %v383_v35  ;;  %v1729_v63 = vld [vmem:[#allocation2 + $0x62] sm:$0xff] }
  0x3e   : > { %v3333_v46 = vld [vmem:[%s5061_s1 + $0xe] sm:$0x3]  ;;  %267 = vst.msk [vmem:[#allocation2 + $0xa8] sm:$0x1] %vm259_vm3, %v248_v44  ;;  %v201_v53 = vld [vmem:[%s4364_s9 + $0xf8] sm:$0xff]  ;;  %v4532_v55 = vpack.c.bf16 %v1728_v41, %v1727_v40  ;;  %v387_v0 = vld [vmem:[#allocation2 + $0x121] sm:$0xff] }
  0x3f   : > { %v249_v54 = vld [vmem:[#allocation2 + $0xc2] sm:$0x1]  ;;  %234 = vst.msk [vmem:[#allocation2 + $0x181] sm:$0xff] %vm203_vm2, %v200_v52  ;;  %235 = vst.msk [vmem:[#allocation2 + $0x189] sm:$0xff] %vm203_vm2, %v201_v53  ;;  %v250_v56 = vld [vmem:[#allocation2 + $0xda] sm:$0x1]  ;;  %v4538_v57 = vand.u32 %v3333_v46, %v4344_v5 }
  0x40   : > { %268 = vst.msk [vmem:[#allocation2 + $0xc0] sm:$0x1] %vm259_vm3, %v249_v54  ;;  %269 = vst.msk [vmem:[#allocation2 + $0xd8] sm:$0x1] %vm259_vm3, %v250_v56  ;;  %v251_v60 = vld [vmem:[#allocation2 + $0xf2] sm:$0x1] }
  0x41   : > { %3607 = vmatmul.mubr.msk.bf16.gmra.mrb[12].mxu1 %vm203_vm2, %v4484_v16  ;;  %v385_v61 = vld [vmem:[#allocation2 + $0x109] sm:$0xff]  ;;  %v386_v62 = vld [vmem:[#allocation2 + $0x111] sm:$0xff]  ;;  %270 = vst.msk [vmem:[#allocation2 + $0xf0] sm:$0x1] %vm259_vm3, %v251_v60  ;;  %v253_v4 = vld [vmem:[#allocation2 + $0x122] sm:$0x1] }
  0x42   : > { %3743 = vmatmul.mubr.msk.bf16.gmra.mrb[12].mxu0 %vm203_vm2, %v4500_v26  ;;  %3610 = vmatprep.mubr.msk.bf16.mxu1 %vm203_vm2, %v4500_v26  ;;  %v252_v1 = vld [vmem:[#allocation2 + $0x10a] sm:$0x1]  ;;  %v1731_v6 = vld [vmem:[#allocation2 + $0x7a] sm:$0xff]  ;;  %v1732_v7 = vld [vmem:[#allocation2 + $0x82] sm:$0xff]  ;;  %272 = vst.msk [vmem:[#allocation2 + $0x120] sm:$0x1] %vm259_vm3, %v253_v4  ;;  %v4554_v10 = vpack.c.bf16 %v386_v62, %v385_v61 }
  0x43   : > { %3764 = vmatprep.mubr.msk.bf16.mxu0 %vm203_vm2, %v4503_v27  ;;  %v1730_v2 = vld [vmem:[#allocation2 + $0x6a] sm:$0xff]  ;;  %271 = vst.msk [vmem:[#allocation2 + $0x108] sm:$0x1] %vm259_vm3, %v252_v1  ;;  %v254_v9 = vld [vmem:[#allocation2 + $0x13a] sm:$0x1]  ;;  %v4562_v15 = vpack.c.bf16 %v1732_v7, %v1731_v6  ;;  %v1733_v19 = vld [vmem:[#allocation2 + $0x92] sm:$0xff] }
  0x44   : > { %v388_v3 = vld [vmem:[#allocation2 + $0x129] sm:$0xff]  ;;  %273 = vst.msk [vmem:[#allocation2 + $0x138] sm:$0x1] %vm259_vm3, %v254_v9  ;;  %v4557_v11 = vpack.c.bf16 %v1730_v2, %v1729_v63  ;;  %v389_v21 = vld [vmem:[#allocation2 + $0x139] sm:$0xff]  ;;  %v390_v22 = vld [vmem:[#allocation2 + $0x141] sm:$0xff] }
  0x45   : > { %v4559_v12 = vpack.c.bf16 %v388_v3, %v387_v0  ;;  %v256_v17 = vld [vmem:[#allocation2 + $0x16a] sm:$0x1]  ;;  %v278_v18 = vld [vmem:[#allocation2 + $0xf] sm:$0x1]  ;;  %v258_v23 = vld [vmem:[#allocation2 + $0x19a] sm:$0x1]  ;;  %v4577_v31 = vpack.c.bf16 %v390_v22, %v389_v21 }
  0x46   : > { %v294_v14 = vld [vmem:[#allocation2 + $0x18f] sm:$0x1]  ;;  %275 = vst.msk [vmem:[#allocation2 + $0x168] sm:$0x1] %vm259_vm3, %v256_v17  ;;  %296 = vst.msk [vmem:[#allocation2 + $0x11] sm:$0x1] %vm259_vm3, %v278_v18 }
  0x47   : > { %312 = vst.msk [vmem:[#allocation2 + $0x191] sm:$0x1] %vm259_vm3, %v294_v14  ;;  %v257_v20 = vld [vmem:[#allocation2 + $0x182] sm:$0x1]  ;;  %v1734_v24 = vld [vmem:[#allocation2 + $0x9a] sm:$0xff]  ;;  %v391_v25 = vld [vmem:[#allocation2 + $0x151] sm:$0xff] }
  0x48   : > { %276 = vst.msk [vmem:[#allocation2 + $0x180] sm:$0x1] %vm259_vm3, %v257_v20  ;;  %v392_v28 = vld [vmem:[#allocation2 + $0x159] sm:$0xff]  ;;  %277 = vst.msk [vmem:[#allocation2 + $0x198] sm:$0x1] %vm259_vm3, %v258_v23  ;;  %v1735_v29 = vld [vmem:[#allocation2 + $0xaa] sm:$0xff]  ;;  %v4579_v32 = vpack.c.bf16 %v1734_v24, %v1733_v19 }
  0x49   : > { %3611 = vmatmul.mubr.msk.bf16.gmra.mrb[16].mxu1 %vm203_vm2, %v4519_v43  ;;  %v1736_v30 = vld [vmem:[#allocation2 + $0xb2] sm:$0xff]  ;;  %v4581_v33 = vpack.c.bf16 %v392_v28, %v391_v25  ;;  %v393_v35 = vld [vmem:[#allocation2 + $0x169] sm:$0xff]  ;;  %v314_v39 = vld [vmem:[#allocation2] sm:$0xff] }
  0x4a   : > { %3765 = vmatmul.mubr.msk.bf16.vlgmr.msra.gmra.mrb[0].mxu0 %vm203_vm2, %v4525_v47  ;;  %3614 = vmatprep.mubr.msk.bf16.mxu1 %vm203_vm2, %v4527_v51  ;;  %v4583_v34 = vpack.c.bf16 %v1736_v30, %v1735_v29  ;;  %v394_v36 = vld [vmem:[#allocation2 + $0x171] sm:$0xff]  ;;  %v1737_v37 = vld [vmem:[#allocation2 + $0xc2] sm:$0xff]  ;;  %v1739_v41 = vld [vmem:[#allocation2 + $0xda] sm:$0xff] }
  0x4b   : > { %3797 = vmatpush3.bf16.msra.mxu0 %v4431_v49  ;;  %3768 = vmatprep.mubr.msk.bf16.mxu0 %vm203_vm2, %v4532_v55  ;;  %v255_v49 = vld [vmem:[#allocation2 + $0x152] sm:$0x1]  ;;  %v1738_v38 = vld [vmem:[#allocation2 + $0xca] sm:$0xff]  ;;  %v1740_v42 = vld [vmem:[#allocation2 + $0xe2] sm:$0xff]  ;;  %v4593_v44 = vpack.c.bf16 %v394_v36, %v393_v35 }
  0x4c   : > { %3830 = vmatprep.subr.bf16.mxu0 %v4538_v57  ;;  %274 = vst.msk [vmem:[#allocation2 + $0x150] sm:$0x1] %vm259_vm3, %v255_v49  ;;  %v315_v40 = vld [vmem:[#allocation2 + $0x8] sm:$0xff]  ;;  %v4595_v46 = vpack.c.bf16 %v1738_v38, %v1737_v37  ;;  %v4597_v53 = vpack.c.bf16 %v1740_v42, %v1739_v41  ;;  %v316_v54 = vld [vmem:[#allocation2 + $0x18] sm:$0xff]  ;;  %v317_v56 = vld [vmem:[#allocation2 + $0x20] sm:$0xff] }
  0x4d   : > { %v346_v52 = vpack.c.bf16 %v315_v40, %v314_v39  ;;  %v1741_v60 = vld [vmem:[#allocation2 + $0xf2] sm:$0xff]  ;;  %v1742_v61 = vld [vmem:[#allocation2 + $0xfa] sm:$0xff]  ;;  %v1743_v0 = vld [vmem:[#allocation2 + $0x10a] sm:$0xff]  ;;  %v4606_v2 = vpack.c.bf16 %v317_v56, %v316_v54 }
  0x4e   : > { %v319_v62 = vld [vmem:[#allocation2 + $0x38] sm:$0xff]  ;;  %v318_v63 = vld [vmem:[#allocation2 + $0x30] sm:$0xff]  ;;  %v3265_v3 = vld [vmem:[%s5061_s1 + $0x6] sm:$0x3]  ;;  %v4611_v4 = vpack.c.bf16 %v1742_v61, %v1741_v60 }
  0x4f   : > { %v1744_v1 = vld [vmem:[#allocation2 + $0x112] sm:$0xff]  ;;  %v4613_v6 = vpack.c.bf16 %v319_v62, %v318_v63  ;;  %v4618_v9 = vand.u32 %v3265_v3, %v4344_v5  ;;  %v320_v49 = vld [vmem:[#allocation2 + $0x48] sm:$0xff]  ;;  %v322_v19 = vld [vmem:[#allocation2 + $0x60] sm:$0xff] }
  0x50   : > { %v4615_v7 = vpack.c.bf16 %v1744_v1, %v1743_v0  ;;  %v321_v14 = vld [vmem:[#allocation2 + $0x50] sm:$0xff]  ;;  %v1745_v17 = vld [vmem:[#allocation2 + $0x122] sm:$0xff]  ;;  %v1747_v21 = vld [vmem:[#allocation2 + $0x13a] sm:$0xff] }
  0x51   : > { %3615 = vmatmul.mubr.msk.bf16.gmra.mrb[20].mxu1 %vm203_vm2, %v4554_v10  ;;  %v1746_v18 = vld [vmem:[#allocation2 + $0x12a] sm:$0xff]  ;;  %v1748_v22 = vld [vmem:[#allocation2 + $0x142] sm:$0xff]  ;;  %v324_v28 = vld [vmem:[#allocation2 + $0x78] sm:$0xff] }
  0x52   : > { %3769 = vmatmul.mubr.msk.bf16.gmra.mrb[4].mxu0 %vm203_vm2, %v4557_v11  ;;  %3618 = vmatprep.mubr.msk.bf16.mxu1 %vm203_vm2, %v4559_v12  ;;  %v323_v20 = vld [vmem:[#allocation2 + $0x68] sm:$0xff]  ;;  %v4632_v23 = vpack.c.bf16 %v1746_v18, %v1745_v17  ;;  %v4636_v25 = vpack.c.bf16 %v1748_v22, %v1747_v21  ;;  %v325_v29 = vld [vmem:[#allocation2 + $0x80] sm:$0xff]  ;;  %v1749_v30 = vld [vmem:[#allocation2 + $0x152] sm:$0xff] }
  0x53   : > { %3772 = vmatprep.mubr.msk.bf16.mxu0 %vm203_vm2, %v4562_v15  ;;  %v4634_v24 = vpack.c.bf16 %v323_v20, %v322_v19  ;;  %v1750_v35 = vld [vmem:[#allocation2 + $0x15a] sm:$0xff]  ;;  %v326_v36 = vld [vmem:[#allocation2 + $0x90] sm:$0xff]  ;;  %v4646_v40 = vpack.c.bf16 %v325_v29, %v324_v28  ;;  %v328_v54 = vld [vmem:[#allocation2 + $0xa8] sm:$0xff] }
  0x54   : > { %v327_v37 = vld [vmem:[#allocation2 + $0x98] sm:$0xff]  ;;  %v1751_v38 = vld [vmem:[#allocation2 + $0x16a] sm:$0xff]  ;;  %v4648_v41 = vpack.c.bf16 %v1750_v35, %v1749_v30  ;;  %v1753_v61 = vld [vmem:[#allocation2 + $0x182] sm:$0xff] }
  0x55   : > { %v1752_v39 = vld [vmem:[#allocation2 + $0x172] sm:$0xff]  ;;  %v4650_v42 = vpack.c.bf16 %v327_v37, %v326_v36  ;;  %v331_v60 = vld [vmem:[#allocation2 + $0xc8] sm:$0xff]  ;;  %v330_v63 = vld [vmem:[#allocation2 + $0xc0] sm:$0xff] }
  0x56   : > { %v329_v56 = vld [vmem:[#allocation2 + $0xb0] sm:$0xff]  ;;  %v4666_v3 = vpack.c.bf16 %v331_v60, %v330_v63  ;;  %v335_v18 = vld [vmem:[#allocation2 + $0xf8] sm:$0xff]  ;;  %v336_v28 = vld [vmem:[#allocation2 + $0x108] sm:$0xff] }
  0x57   : > { %v1754_v62 = vld [vmem:[#allocation2 + $0x18a] sm:$0xff]  ;;  %v4662_v0 = vpack.c.bf16 %v329_v56, %v328_v54  ;;  %v338_v30 = vld [vmem:[#allocation2 + $0x120] sm:$0xff] }
  0x58   : > { %v4664_v1 = vpack.c.bf16 %v1754_v62, %v1753_v61  ;;  %v334_v17 = vld [vmem:[#allocation2 + $0xf0] sm:$0xff]  ;;  %v339_v35 = vld [vmem:[#allocation2 + $0x128] sm:$0xff]  ;;  %v341_v37 = vld [vmem:[#allocation2 + $0x140] sm:$0xff] }
  0x59   : > { %3619 = vmatmul.mubr.msk.bf16.gmra.mrb[24].mxu1 %vm203_vm2, %v4577_v31  ;;  %v3350_v20 = vld [vmem:[%s5061_s1 + $0x10] sm:$0x3]  ;;  %v4681_v21 = vpack.c.bf16 %v335_v18, %v334_v17  ;;  %v4698_v36 = vpack.c.bf16 %v339_v35, %v338_v30  ;;  %v344_v60 = vld [vmem:[#allocation2 + $0x168] sm:$0xff]  ;;  %v295_v18 = vld [vmem:[#allocation2 + $0x1a7] sm:$0x1] }
  0x5a   : > { %3773 = vmatmul.mubr.msk.bf16.gmra.mrb[8].mxu0 %vm203_vm2, %v4579_v32  ;;  %3622 = vmatprep.mubr.msk.bf16.mxu1 %vm203_vm2, %v4581_v33  ;;  %v4684_v22 = vand.u32 %v3350_v20, %v4344_v5  ;;  %v337_v29 = vld [vmem:[#allocation2 + $0x110] sm:$0xff]  ;;  %v841_v62 = vld [vmem:[#allocation2 + $0x2] sm:$0xff]  ;;  %313 = vst.msk [vmem:[#allocation2 + $0x1a9] sm:$0x1] %vm259_vm3, %v295_v18  ;;  %v2048_v20 = vld [vmem:[#allocation2 + $0x198] sm:$0xff] }
  0x5b   : > { %3776 = vmatprep.mubr.msk.bf16.mxu0 %vm203_vm2, %v4583_v34  ;;  %v4696_v5 = vpack.c.bf16 %v337_v29, %v336_v28  ;;  %v345_v61 = vld [vmem:[#allocation2 + $0x170] sm:$0xff]  ;;  %v2049_v28 = vld [vmem:[#allocation2 + $0x1a0] sm:$0xff] }
  0x5c   : > { %v842_v63 = vld [vmem:[#allocation2 + $0xa] sm:$0xff]  ;;  %v2065_v29 = vpack.c.bf16 %v2049_v28, %v2048_v20 }
  0x61   : > { %3623 = vmatmul.mubr.msk.bf16.gmra.mrb[28].mxu1 %vm203_vm2, %v4593_v44 }
  0x62   : > { %3777 = vmatmul.mubr.msk.bf16.gmra.mrb[12].mxu0 %vm203_vm2, %v4595_v46  ;;  %3628 = vmatprep.mubr.msk.bf16.mxu1 %vm203_vm2, %v346_v52  ;;  %v4652_v52 = vpack.c.bf16 %v1752_v39, %v1751_v38  ;;  %v342_v38 = vld [vmem:[#allocation2 + $0x150] sm:$0xff]  ;;  %v343_v39 = vld [vmem:[#allocation2 + $0x158] sm:$0xff] }
  0x63   : > { %3780 = vmatprep.mubr.msk.bf16.mxu0 %vm203_vm2, %v4597_v53  ;;  %v4710_v56 = vpack.c.bf16 %v343_v39, %v342_v38  ;;  %v4900_v38 = vld [vmem:[%s5062_s2] ss:$0 sm:$0xff] }
  0x69   : > { %3629 = vmatmul.mubr.msk.bf16.vlgmr.msra.gmra.mrb[0].mxu1 %vm203_vm2, %v4606_v2 }
  0x6a   : > { %3661 = vmatpush3.bf16.msra.mxu1 %v4436_v50  ;;  %3781 = vmatmul.mubr.msk.bf16.gmra.mrb[16].mxu0 %vm203_vm2, %v4611_v4  ;;  %v4630_v50 = vpack.c.bf16 %v321_v14, %v320_v49  ;;  %v332_v49 = vld [vmem:[#allocation2 + $0xd8] sm:$0xff]  ;;  %v333_v14 = vld [vmem:[#allocation2 + $0xe0] sm:$0xff] }
  0x6b   : > { %3632 = vmatprep.mubr.msk.bf16.mxu1 %vm203_vm2, %v4613_v6  ;;  %3784 = vmatprep.mubr.msk.bf16.mxu0 %vm203_vm2, %v4615_v7  ;;  %v4676_v19 = vpack.c.bf16 %v333_v14, %v332_v49  ;;  %v4720_v49 = vpack.c.bf16 %v345_v61, %v344_v60  ;;  %v873_v14 = vpack.c.bf16 %v842_v63, %v841_v62 }
  0x6c   : > { %3694 = vmatprep.subr.bf16.mxu1 %v4618_v9 }
  0x71   : > { %3633 = vmatmul.mubr.msk.bf16.gmra.mrb[4].mxu1 %vm203_vm2, %v4630_v50 }
  0x72   : > { %3785 = vmatmul.mubr.msk.bf16.gmra.mrb[20].mxu0 %vm203_vm2, %v4632_v23  ;;  %3636 = vmatprep.mubr.msk.bf16.mxu1 %vm203_vm2, %v4634_v24 }
  0x73   : > { %3788 = vmatprep.mubr.msk.bf16.mxu0 %vm203_vm2, %v4636_v25 }
  0x79   : > { %3637 = vmatmul.mubr.msk.bf16.gmra.mrb[8].mxu1 %vm203_vm2, %v4646_v40 }
  0x7a   : > { %3789 = vmatmul.mubr.msk.bf16.gmra.mrb[24].mxu0 %vm203_vm2, %v4648_v41  ;;  %3640 = vmatprep.mubr.msk.bf16.mxu1 %vm203_vm2, %v4650_v42 }
  0x7b   : > { %3792 = vmatprep.mubr.msk.bf16.mxu0 %vm203_vm2, %v4652_v52 }
  0x81   : > { %3641 = vmatmul.mubr.msk.bf16.gmra.mrb[12].mxu1 %vm203_vm2, %v4662_v0 }
  0x82   : > { %3793 = vmatmul.mubr.msk.bf16.gmra.mrb[28].mxu0 %vm203_vm2, %v4664_v1  ;;  %3644 = vmatprep.mubr.msk.bf16.mxu1 %vm203_vm2, %v4666_v3 }
  0x83   : > { %3798 = vmatprep.mubr.msk.bf16.mxu0 %vm203_vm2, %v4613_v6 }
  0x89   : > { %3645 = vmatmul.mubr.msk.bf16.gmra.mrb[16].mxu1 %vm203_vm2, %v4676_v19 }
  0x8a   : > { %3799 = vmatmul.mubr.msk.bf16.vlgmr.msra.gmra.mrb[0].mxu0 %vm203_vm2, %v4630_v50  ;;  %3648 = vmatprep.mubr.msk.bf16.mxu1 %vm203_vm2, %v4681_v21 }
  0x8b   : > { %3831 = vmatpush3.bf16.msra.mxu0 %v4538_v57  ;;  %3802 = vmatprep.mubr.msk.bf16.mxu0 %vm203_vm2, %v4634_v24  ;;  %v340_v57 = vld [vmem:[#allocation2 + $0x138] sm:$0xff] }
  0x8c   : > { %3864 = vmatprep.subr.bf16.mxu0 %v4684_v22  ;;  %v4708_v54 = vpack.c.bf16 %v341_v37, %v340_v57 }
  0x91   : > { %3649 = vmatmul.mubr.msk.bf16.gmra.mrb[20].mxu1 %vm203_vm2, %v4696_v5 }
  0x92   : > { %3803 = vmatmul.mubr.msk.bf16.gmra.mrb[4].mxu0 %vm203_vm2, %v4646_v40  ;;  %3652 = vmatprep.mubr.msk.bf16.mxu1 %vm203_vm2, %v4698_v36 }
  0x93   : > { %3806 = vmatprep.mubr.msk.bf16.mxu0 %vm203_vm2, %v4650_v42 }
  0x99   : > { %3653 = vmatmul.mubr.msk.bf16.gmra.mrb[24].mxu1 %vm203_vm2, %v4708_v54 }
  0x9a   : > { %3807 = vmatmul.mubr.msk.bf16.gmra.mrb[8].mxu0 %vm203_vm2, %v4662_v0  ;;  %3656 = vmatprep.mubr.msk.bf16.mxu1 %vm203_vm2, %v4710_v56 }
  0x9b   : > { %3810 = vmatprep.mubr.msk.bf16.mxu0 %vm203_vm2, %v4666_v3 }
  0xa1   : > { %3657 = vmatmul.mubr.msk.bf16.gmra.mrb[28].mxu1 %vm203_vm2, %v4720_v49 }
  0xa2   : > { %3811 = vmatmul.mubr.msk.bf16.gmra.mrb[12].mxu0 %vm203_vm2, %v4676_v19  ;;  %3662 = vmatprep.mubr.msk.bf16.mxu1 %vm203_vm2, %v873_v14 }
  0xa3   : > { %3814 = vmatprep.mubr.msk.bf16.mxu0 %vm203_vm2, %v4681_v21 }
  0xa9   : > { %3663 = vmatmul.mubr.msk.bf16.vlgmr.msra.gmra.mrb[0].mxu1 %vm203_vm2, %v4503_v27  ;;  %v2046_v27 = vld [vmem:[#allocation2 + $0x180] sm:$0xff] }
  0xaa   : > { %3695 = vmatpush3.bf16.msra.mxu1 %v4618_v9  ;;  %3815 = vmatmul.mubr.msk.bf16.gmra.mrb[16].mxu0 %vm203_vm2, %v4696_v5  ;;  %v2047_v9 = vld [vmem:[#allocation2 + $0x188] sm:$0xff] }
  0xab   : > { %3666 = vmatprep.mubr.msk.bf16.mxu1 %vm203_vm2, %v4525_v47  ;;  %3818 = vmatprep.mubr.msk.bf16.mxu0 %vm203_vm2, %v4698_v36  ;;  %v4747_v17 = vpack.c.bf16 %v2047_v9, %v2046_v27 }
  0xac   : > { %3898 = vmatprep.subr.bf16.mxu1 %v4352_v8 }
  0xb1   : > { %3667 = vmatmul.mubr.msk.bf16.gmra.mrb[4].mxu1 %vm203_vm2, %v4532_v55 }
  0xb2   : > { %3819 = vmatmul.mubr.msk.bf16.gmra.mrb[20].mxu0 %vm203_vm2, %v4708_v54  ;;  %3670 = vmatprep.mubr.msk.bf16.mxu1 %vm203_vm2, %v4557_v11 }
  0xb3   : > { %3822 = vmatprep.mubr.msk.bf16.mxu0 %vm203_vm2, %v4710_v56 }
  0xb9   : > { %3671 = vmatmul.mubr.msk.bf16.gmra.mrb[8].mxu1 %vm203_vm2, %v4562_v15 }
  0xba   : > { %3823 = vmatmul.mubr.msk.bf16.gmra.mrb[24].mxu0 %vm203_vm2, %v4720_v49  ;;  %3674 = vmatprep.mubr.msk.bf16.mxu1 %vm203_vm2, %v4579_v32 }
  0xbb   : > { %3826 = vmatprep.mubr.msk.bf16.mxu0 %vm203_vm2, %v4747_v17 }
  0xc1   : > { %3675 = vmatmul.mubr.msk.bf16.gmra.mrb[12].mxu1 %vm203_vm2, %v4583_v34 }
  0xc2   : > { %3827 = vmatmul.mubr.msk.bf16.gmra.mrb[28].mxu0 %vm203_vm2, %v2065_v29  ;;  %3678 = vmatprep.mubr.msk.bf16.mxu1 %vm203_vm2, %v4595_v46 }
  0xc3   : > { %3832 = vmatprep.mubr.msk.bf16.mxu0 %vm203_vm2, %v4425_v45  ;;  %v2341_v45 = vld [vmem:[#allocation2 + $0x189] sm:$0xff] }
  0xc9   : > { %3679 = vmatmul.mubr.msk.bf16.gmra.mrb[16].mxu1 %vm203_vm2, %v4597_v53 }
  0xca   : > { %3833 = vmatmul.mubr.msk.bf16.vlgmr.msra.gmra.mrb[0].mxu0 %vm203_vm2, %v4428_v48  ;;  %3682 = vmatprep.mubr.msk.bf16.mxu1 %vm203_vm2, %v4611_v4 }
  0xcb   : > { %3865 = vmatpush3.bf16.msra.mxu0 %v4684_v22  ;;  %3836 = vmatprep.mubr.msk.bf16.mxu0 %vm203_vm2, %v4450_v58  ;;  %v2342_v58 = vld [vmem:[#allocation2 + $0x199] sm:$0xff] }
  0xd1   : > { %3683 = vmatmul.mubr.msk.bf16.gmra.mrb[20].mxu1 %vm203_vm2, %v4615_v7 }
  0xd2   : > { %3837 = vmatmul.mubr.msk.bf16.gmra.mrb[4].mxu0 %vm203_vm2, %v4453_v59  ;;  %3686 = vmatprep.mubr.msk.bf16.mxu1 %vm203_vm2, %v4632_v23  ;;  %v2343_v59 = vld [vmem:[#allocation2 + $0x1a1] sm:$0xff] }
  0xd3   : > { %3840 = vmatprep.mubr.msk.bf16.mxu0 %vm203_vm2, %v4481_v13  ;;  %v2359_v13 = vpack.c.bf16 %v2343_v59, %v2342_v58 }
  0xd9   : > { %3687 = vmatmul.mubr.msk.bf16.gmra.mrb[24].mxu1 %vm203_vm2, %v4636_v25 }
  0xda   : > { %3841 = vmatmul.mubr.msk.bf16.gmra.mrb[8].mxu0 %vm203_vm2, %v4484_v16  ;;  %3690 = vmatprep.mubr.msk.bf16.mxu1 %vm203_vm2, %v4648_v41  ;;  %v1445_v16 = vld [vmem:[#allocation2 + $0xd9] sm:$0xff] }
  0xdb   : > { %3844 = vmatprep.mubr.msk.bf16.mxu0 %vm203_vm2, %v4500_v26  ;;  %v1446_v26 = vld [vmem:[#allocation2 + $0xe1] sm:$0xff] }
  0xe1   : > { %3691 = vmatmul.mubr.msk.bf16.gmra.mrb[28].mxu1 %vm203_vm2, %v4652_v52 }
  0xe2   : > { %3845 = vmatmul.mubr.msk.bf16.gmra.mrb[12].mxu0 %vm203_vm2, %v4519_v43  ;;  %3696 = vmatprep.mubr.msk.bf16.mxu1 %vm203_vm2, %v4606_v2  ;;  %v1469_v43 = vpack.c.bf16 %v1446_v26, %v1445_v16  ;;  %v1457_v2 = vld [vmem:[#allocation2 + $0x169] sm:$0xff] }
  0xe3   : > { %3848 = vmatprep.mubr.msk.bf16.mxu0 %vm203_vm2, %v4527_v51  ;;  %v1448_v51 = vld [vmem:[#allocation2 + $0xf9] sm:$0xff] }
  0xe9   : > { %3697 = vmatmul.mubr.msk.bf16.vlgmr.msra.gmra.mrb[0].mxu1 %vm203_vm2, %v4613_v6 }
  0xea   : > { %3899 = vmatpush3.bf16.msra.mxu1 %v4352_v8  ;;  %3849 = vmatmul.mubr.msk.bf16.gmra.mrb[16].mxu0 %vm203_vm2, %v4554_v10  ;;  %v2340_v8 = vld [vmem:[#allocation2 + $0x181] sm:$0xff]  ;;  %v1450_v10 = vld [vmem:[#allocation2 + $0x111] sm:$0xff] }
  0xeb   : > { %3700 = vmatprep.mubr.msk.bf16.mxu1 %vm203_vm2, %v4630_v50  ;;  %3852 = vmatprep.mubr.msk.bf16.mxu0 %vm203_vm2, %v4559_v12  ;;  %v4815_v48 = vpack.c.bf16 %v2341_v45, %v2340_v8  ;;  %v2636_v50 = vld [vmem:[#allocation2 + $0x19a] sm:$0xff] }
  0xf1   : > { %3701 = vmatmul.mubr.msk.bf16.gmra.mrb[4].mxu1 %vm203_vm2, %v4634_v24 }
  0xf2   : > { %3853 = vmatmul.mubr.msk.bf16.gmra.mrb[20].mxu0 %vm203_vm2, %v4577_v31  ;;  %3704 = vmatprep.mubr.msk.bf16.mxu1 %vm203_vm2, %v4646_v40  ;;  %v1452_v31 = vld [vmem:[#allocation2 + $0x129] sm:$0xff] }
  0xf3   : > { %3856 = vmatprep.mubr.msk.bf16.mxu0 %vm203_vm2, %v4581_v33  ;;  %v1454_v33 = vld [vmem:[#allocation2 + $0x141] sm:$0xff] }
  0xf9   : > { %3705 = vmatmul.mubr.msk.bf16.gmra.mrb[8].mxu1 %vm203_vm2, %v4650_v42 }
  0xfa   : > { %3857 = vmatmul.mubr.msk.bf16.gmra.mrb[24].mxu0 %vm203_vm2, %v4593_v44  ;;  %3708 = vmatprep.mubr.msk.bf16.mxu1 %vm203_vm2, %v4662_v0 }
  0xfb   : > { %3860 = vmatprep.mubr.msk.bf16.mxu0 %vm203_vm2, %v4815_v48 }
 0x101   : > { %3709 = vmatmul.mubr.msk.bf16.gmra.mrb[12].mxu1 %vm203_vm2, %v4666_v3 }
 0x102   : > { %3861 = vmatmul.mubr.msk.bf16.gmra.mrb[28].mxu0 %vm203_vm2, %v2359_v13  ;;  %3712 = vmatprep.mubr.msk.bf16.mxu1 %vm203_vm2, %v4676_v19 }
 0x103   : > { %3866 = vmatprep.mubr.msk.bf16.mxu0 %vm203_vm2, %v4525_v47  ;;  %v1447_v47 = vld [vmem:[#allocation2 + $0xf1] sm:$0xff] }
 0x109   : > { %3713 = vmatmul.mubr.msk.bf16.gmra.mrb[16].mxu1 %vm203_vm2, %v4681_v21 }
 0x10a   : > { %3867 = vmatmul.mubr.msk.bf16.vlgmr.msra.gmra.mrb[0].mxu0 %vm203_vm2, %v4532_v55  ;;  %3716 = vmatprep.mubr.msk.bf16.mxu1 %vm203_vm2, %v4696_v5  ;;  %v1449_v55 = vld [vmem:[#allocation2 + $0x109] sm:$0xff] }
 0x10b   : > { %3870 = vmatprep.mubr.msk.bf16.mxu0 %vm203_vm2, %v4557_v11  ;;  %v1470_v11 = vpack.c.bf16 %v1448_v51, %v1447_v47  ;;  %v1471_v12 = vpack.c.bf16 %v1450_v10, %v1449_v55 }
 0x111   : > { %3717 = vmatmul.mubr.msk.bf16.gmra.mrb[20].mxu1 %vm203_vm2, %v4698_v36 }
 0x112   : > { %3871 = vmatmul.mubr.msk.bf16.gmra.mrb[4].mxu0 %vm203_vm2, %v4562_v15  ;;  %3720 = vmatprep.mubr.msk.bf16.mxu1 %vm203_vm2, %v4708_v54  ;;  %v1451_v15 = vld [vmem:[#allocation2 + $0x121] sm:$0xff] }
 0x113   : > { %3874 = vmatprep.mubr.msk.bf16.mxu0 %vm203_vm2, %v4579_v32  ;;  %v1453_v32 = vld [vmem:[#allocation2 + $0x139] sm:$0xff] }
 0x114   : > { %v1473_v44 = vpack.c.bf16 %v1454_v33, %v1453_v32 }
 0x119   : > { %3721 = vmatmul.mubr.msk.bf16.gmra.mrb[24].mxu1 %vm203_vm2, %v4710_v56 }
 0x11a   : > { %3875 = vmatmul.mubr.msk.bf16.gmra.mrb[8].mxu0 %vm203_vm2, %v4583_v34  ;;  %3724 = vmatprep.mubr.msk.bf16.mxu1 %vm203_vm2, %v4720_v49  ;;  %v1472_v34 = vpack.c.bf16 %v1452_v31, %v1451_v15 }
 0x11b   : > { %3878 = vmatprep.mubr.msk.bf16.mxu0 %vm203_vm2, %v4595_v46  ;;  %v1455_v46 = vld [vmem:[#allocation2 + $0x151] sm:$0xff] }
 0x121   : > { %3725 = vmatmul.mubr.msk.bf16.gmra.mrb[28].mxu1 %vm203_vm2, %v4747_v17 }
 0x122   : > { %3879 = vmatmul.mubr.msk.bf16.gmra.mrb[12].mxu0 %vm203_vm2, %v4597_v53  ;;  %3746 = vmatprep.mubr.msk.bf16.mxu1 %vm203_vm2, %v1469_v43  ;;  %v1456_v53 = vld [vmem:[#allocation2 + $0x159] sm:$0xff] }
 0x123   : > { %3882 = vmatprep.mubr.msk.bf16.mxu0 %vm203_vm2, %v4611_v4  ;;  %v1458_v4 = vld [vmem:[#allocation2 + $0x171] sm:$0xff]  ;;  %v1474_v6 = vpack.c.bf16 %v1456_v53, %v1455_v46 }
 0x129   : > { %3747 = vmatmul.mubr.msk.bf16.vlgmr.msra.gmra.mrb[16].mxu1 %vm203_vm2, %v1470_v11 }
 0x12a   : > { %3883 = vmatmul.mubr.msk.bf16.gmra.mrb[16].mxu0 %vm203_vm2, %v4615_v7  ;;  %3750 = vmatprep.mubr.msk.bf16.mxu1 %vm203_vm2, %v1471_v12  ;;  %v1475_v7 = vpack.c.bf16 %v1458_v4, %v1457_v2 }
 0x12b   : > { %3886 = vmatprep.mubr.msk.bf16.mxu0 %vm203_vm2, %v4632_v23  ;;  %v2637_v23 = vld [vmem:[#allocation2 + $0x1a2] sm:$0xff] }
 0x12c   : > { %v2653_v24 = vpack.c.bf16 %v2637_v23, %v2636_v50 }
 0x131   : > { %3751 = vmatmul.mubr.msk.bf16.gmra.mrb[20].mxu1 %vm203_vm2, %v1472_v34 }
 0x132   : > { %3887 = vmatmul.mubr.msk.bf16.gmra.mrb[20].mxu0 %vm203_vm2, %v4636_v25  ;;  %3754 = vmatprep.mubr.msk.bf16.mxu1 %vm203_vm2, %v1473_v44 }
 0x133   : > { %3890 = vmatprep.mubr.msk.bf16.mxu0 %vm203_vm2, %v4648_v41 }
 0x139   : > { %3755 = vmatmul.mubr.msk.bf16.gmra.mrb[24].mxu1 %vm203_vm2, %v1474_v6 }
 0x13a   : > { %3891 = vmatmul.mubr.msk.bf16.gmra.mrb[24].mxu0 %vm203_vm2, %v4652_v52  ;;  %3758 = vmatprep.mubr.msk.bf16.mxu1 %vm203_vm2, %v1475_v7 }
 0x13b   : > { %3894 = vmatprep.mubr.msk.bf16.mxu0 %vm203_vm2, %v4664_v1 }
 0x141   : > { %3759 = vmatmul.mubr.msk.bf16.gmra.mrb[28].mxu1 %vm203_vm2, %v4815_v48 }
 0x142   : > { %3895 = vmatmul.mubr.msk.bf16.gmra.mrb[28].mxu0 %vm203_vm2, %v2653_v24 }
 0x1bc   : > { %v3698_v25 = vpop.f32.mrb[0].mxu1 }
 0x1bd   : > { %v1270_v40 = vpop.f32.mrb[1].mxu1 }
 0x1be   : > { %v3699_v41 = vpop.f32.mrb[2].mxu1 }
 0x1bf   : > { %v1273_v42 = vpop.f32.mrb[3].mxu1 }
 0x1c4   : > { %v3702_v0 = vpop.f32.mrb[4].mxu1 }
 0x1c5   : > { %v1286_v52 = vpop.f32.mrb[5].mxu1 }
 0x1c6   : > { %v3703_v3 = vpop.f32.mrb[6].mxu1 }
 0x1c7   : > { %v1289_v19 = vpop.f32.mrb[7].mxu1 }
 0x1cc   : > { %v3706_v21 = vpop.f32.mrb[8].mxu1 }
 0x1cd   : > { %v1302_v1 = vpop.f32.mrb[9].mxu1 }
 0x1ce   : > { %v4884_v22 = vpop.f32.mrb[10].mxu1 }
 0x1cf   : > { %v4886_v30 = vpop.f32.mrb[11].mxu1 }
 0x1d4   : > { %v4888_v35 = vpop.f32.mrb[12].mxu1 }
 0x1d5   : > { %v4890_v5 = vpop.f32.mrb[13].mxu1 }
 0x1d6   : > { %v4892_v36 = vpop.f32.mrb[14].mxu1 }
 0x1d7   : > { %v4894_v57 = vpop.f32.mrb[15].mxu1 }
 0x1dd   : > { %v3868_v37 = vpop.f32.mrb[0].mxu0 }
 0x1de   : > { %v3900_v39 = vadd.f32 %v3868_v37, %v3698_v25  ;;  %v2741_v54 = vpop.f32.mrb[1].mxu0 }
 0x1df   : > { %v3901_v56 = vadd.f32 %v2741_v54, %v1270_v40  ;;  %v3869_v60 = vpop.f32.mrb[2].mxu0 }
 0x1e0   : > { %v2909_v61 = vadd.f32 %v3900_v39, %v4900_v38  ;;  %v3902_v62 = vadd.f32 %v3869_v60, %v3699_v41  ;;  %v2744_v63 = vpop.f32.mrb[3].mxu0 }
 0x1e1   : > { %v2907_v49 = vadd.f32 %v3901_v56, %v4900_v38  ;;  %v3903_v14 = vadd.f32 %v2744_v63, %v1273_v42 }
 0x1e2   : > { %v2941_v27 = vmax.f32 %v2909_v61, 0.0  ;;  %v2910_v9 = vadd.f32 %v3902_v62, %v4900_v38 }
 0x1e3   : > { %v2939_v17 = vmax.f32 %v2907_v49, 0.0  ;;  %v2908_v18 = vadd.f32 %v3903_v14, %v4900_v38 }
 0x1e4   : > { %v3408_v20 = vpack.c.bf16 %v2941_v27, %v2941_v27  ;;  %v2942_v28 = vmax.f32 %v2910_v9, 0.0 }
 0x1e5   : > { %v3406_v29 = vpack.c.bf16 %v2939_v17, %v2939_v17  ;;  %v2940_v8 = vmax.f32 %v2908_v18, 0.0  ;;  %v3872_v45 = vpop.f32.mrb[4].mxu0 }
 0x1e6   : > { %3102 = vst.msk [vmem:[%s4908_s6 + $0x8] sm:$0xf] %vm3099_vm4, %v3408_v20  ;;  %v3409_v48 = vpack.c.bf16 %v2942_v28, %v2942_v28  ;;  %v3904_v58 = vadd.f32 %v3872_v45, %v3702_v0  ;;  %v2757_v59 = vpop.f32.mrb[5].mxu0 }
 0x1e7   : > { %3100 = vst.msk [vmem:[%s4908_s6] sm:$0xf] %vm3099_vm4, %v3406_v29  ;;  %v3407_v13 = vpack.c.bf16 %v2940_v8, %v2940_v8  ;;  %v3905_v16 = vadd.f32 %v2757_v59, %v1286_v52  ;;  %v3873_v26 = vpop.f32.mrb[6].mxu0 }
 0x1e8   : > { %3103 = vst.msk [vmem:[%s4908_s6 + $0xc] sm:$0xf] %vm3099_vm4, %v3409_v48  ;;  %v2913_v43 = vadd.f32 %v3904_v58, %v4900_v38  ;;  %v3906_v47 = vadd.f32 %v3873_v26, %v3703_v3  ;;  %v2760_v51 = vpop.f32.mrb[7].mxu0 }
 0x1e9   : > { %3101 = vst.msk [vmem:[%s4908_s6 + $0x4] sm:$0xf] %vm3099_vm4, %v3407_v13  ;;  %v2911_v55 = vadd.f32 %v3905_v16, %v4900_v38  ;;  %v3907_v10 = vadd.f32 %v2760_v51, %v1289_v19 }
 0x1ea   : > { %v2945_v11 = vmax.f32 %v2913_v43, 0.0  ;;  %v2914_v12 = vadd.f32 %v3906_v47, %v4900_v38 }
 0x1eb   : > { %v2943_v15 = vmax.f32 %v2911_v55, 0.0  ;;  %v2912_v31 = vadd.f32 %v3907_v10, %v4900_v38 }
 0x1ec   : > { %v3412_v32 = vpack.c.bf16 %v2945_v11, %v2945_v11  ;;  %v2946_v33 = vmax.f32 %v2914_v12, 0.0 }
 0x1ed   : > { %v3410_v34 = vpack.c.bf16 %v2943_v15, %v2943_v15  ;;  %v2944_v44 = vmax.f32 %v2912_v31, 0.0  ;;  %v3876_v46 = vpop.f32.mrb[8].mxu0 }
 0x1ee   : > { %3106 = vst.msk [vmem:[%s4908_s6 + $0x18] sm:$0xf] %vm3099_vm4, %v3412_v32  ;;  %v3413_v53 = vpack.c.bf16 %v2946_v33, %v2946_v33  ;;  %v3908_v2 = vadd.f32 %v3876_v46, %v3706_v21  ;;  %v2773_v4 = vpop.f32.mrb[9].mxu0 }
 0x1ef   : > { %3104 = vst.msk [vmem:[%s4908_s6 + $0x10] sm:$0xf] %vm3099_vm4, %v3410_v34  ;;  %v3411_v6 = vpack.c.bf16 %v2944_v44, %v2944_v44  ;;  %v3909_v7 = vadd.f32 %v2773_v4, %v1302_v1  ;;  %v3877_v50 = vpop.f32.mrb[10].mxu0 }
 0x1f0   : > { %3107 = vst.msk [vmem:[%s4908_s6 + $0x1c] sm:$0xf] %vm3099_vm4, %v3413_v53  ;;  %v2917_v23 = vadd.f32 %v3908_v2, %v4900_v38  ;;  %v3910_v24 = vadd.f32 %v3877_v50, %v4884_v22  ;;  %v2776_v25 = vpop.f32.mrb[11].mxu0 }
 0x1f1   : > { %3105 = vst.msk [vmem:[%s4908_s6 + $0x14] sm:$0xf] %vm3099_vm4, %v3411_v6  ;;  %v2915_v40 = vadd.f32 %v3909_v7, %v4900_v38  ;;  %v3911_v41 = vadd.f32 %v2776_v25, %v4886_v30 }
 0x1f2   : > { %v2949_v42 = vmax.f32 %v2917_v23, 0.0  ;;  %v2918_v0 = vadd.f32 %v3910_v24, %v4900_v38 }
 0x1f3   : > { %v2947_v52 = vmax.f32 %v2915_v40, 0.0  ;;  %v2916_v3 = vadd.f32 %v3911_v41, %v4900_v38 }
 0x1f4   : > { %v3416_v19 = vpack.c.bf16 %v2949_v42, %v2949_v42  ;;  %v2950_v21 = vmax.f32 %v2918_v0, 0.0 }
 0x1f5   : > { %v3414_v1 = vpack.c.bf16 %v2947_v52, %v2947_v52  ;;  %v2948_v22 = vmax.f32 %v2916_v3, 0.0  ;;  %v3880_v37 = vpop.f32.mrb[12].mxu0 }
 0x1f6   : > { %3110 = vst.msk [vmem:[%s4908_s6 + $0x28] sm:$0xf] %vm3099_vm4, %v3416_v19  ;;  %v3417_v39 = vpack.c.bf16 %v2950_v21, %v2950_v21  ;;  %v3912_v54 = vadd.f32 %v3880_v37, %v4888_v35  ;;  %v2789_v56 = vpop.f32.mrb[13].mxu0 }
 0x1f7   : > { %3108 = vst.msk [vmem:[%s4908_s6 + $0x20] sm:$0xf] %vm3099_vm4, %v3414_v1  ;;  %v3415_v30 = vpack.c.bf16 %v2948_v22, %v2948_v22  ;;  %v3913_v60 = vadd.f32 %v2789_v56, %v4890_v5  ;;  %v3881_v61 = vpop.f32.mrb[14].mxu0 }
 0x1f8   : > { %3111 = vst.msk [vmem:[%s4908_s6 + $0x2c] sm:$0xf] %vm3099_vm4, %v3417_v39  ;;  %v2921_v62 = vadd.f32 %v3912_v54, %v4900_v38  ;;  %v3914_v63 = vadd.f32 %v3881_v61, %v4892_v36  ;;  %v2792_v49 = vpop.f32.mrb[15].mxu0 }
 0x1f9   : > { %3109 = vst.msk [vmem:[%s4908_s6 + $0x24] sm:$0xf] %vm3099_vm4, %v3415_v30  ;;  %v2919_v14 = vadd.f32 %v3913_v60, %v4900_v38  ;;  %v3915_v35 = vadd.f32 %v2792_v49, %v4894_v57 }
 0x1fa   : > { %v2953_v27 = vmax.f32 %v2921_v62, 0.0  ;;  %v2922_v9 = vadd.f32 %v3914_v63, %v4900_v38 }
 0x1fb   : > { %v2951_v5 = vmax.f32 %v2919_v14, 0.0  ;;  %v2920_v17 = vadd.f32 %v3915_v35, %v4900_v38 }
 0x1fc   : > { %v3420_v18 = vpack.c.bf16 %v2953_v27, %v2953_v27  ;;  %v2954_v20 = vmax.f32 %v2922_v9, 0.0  ;;  %v3748_v28 = vpop.f32.mrb[16].mxu1 }
 0x1fd   : > { %v3418_v36 = vpack.c.bf16 %v2951_v5, %v2951_v5  ;;  %v2952_v29 = vmax.f32 %v2920_v17, 0.0  ;;  %v3884_v8 = vpop.f32.mrb[16].mxu0  ;;  %v1628_v45 = vpop.f32.mrb[17].mxu1 }
 0x1fe   : > { %3114 = vst.msk [vmem:[%s4908_s6 + $0x38] sm:$0xf] %vm3099_vm4, %v3420_v18  ;;  %v3421_v48 = vpack.c.bf16 %v2954_v20, %v2954_v20  ;;  %v3916_v57 = vadd.f32 %v3884_v8, %v3748_v28  ;;  %v2805_v58 = vpop.f32.mrb[17].mxu0  ;;  %v3749_v59 = vpop.f32.mrb[18].mxu1 }
 0x1ff   : > { %3112 = vst.msk [vmem:[%s4908_s6 + $0x30] sm:$0xf] %vm3099_vm4, %v3418_v36  ;;  %v3419_v13 = vpack.c.bf16 %v2952_v29, %v2952_v29  ;;  %v3917_v16 = vadd.f32 %v2805_v58, %v1628_v45  ;;  %v3885_v26 = vpop.f32.mrb[18].mxu0  ;;  %v1631_v43 = vpop.f32.mrb[19].mxu1 }
 0x200   : > { %3115 = vst.msk [vmem:[%s4908_s6 + $0x3c] sm:$0xf] %vm3099_vm4, %v3421_v48  ;;  %v2925_v47 = vadd.f32 %v3916_v57, %v4900_v38  ;;  %v3918_v51 = vadd.f32 %v3885_v26, %v3749_v59  ;;  %v2808_v55 = vpop.f32.mrb[19].mxu0 }
 0x201   : > { %3113 = vst.msk [vmem:[%s4908_s6 + $0x34] sm:$0xf] %vm3099_vm4, %v3419_v13  ;;  %v2923_v10 = vadd.f32 %v3917_v16, %v4900_v38  ;;  %v3919_v11 = vadd.f32 %v2808_v55, %v1631_v43 }
 0x202   : > { %v2957_v12 = vmax.f32 %v2925_v47, 0.0  ;;  %v2926_v15 = vadd.f32 %v3918_v51, %v4900_v38 }
 0x203   : > { %v2955_v31 = vmax.f32 %v2923_v10, 0.0  ;;  %v2924_v32 = vadd.f32 %v3919_v11, %v4900_v38 }
 0x204   : > { %v3424_v33 = vpack.c.bf16 %v2957_v12, %v2957_v12  ;;  %v2958_v34 = vmax.f32 %v2926_v15, 0.0  ;;  %v3752_v44 = vpop.f32.mrb[20].mxu1 }
 0x205   : > { %v3422_v46 = vpack.c.bf16 %v2955_v31, %v2955_v31  ;;  %v2956_v53 = vmax.f32 %v2924_v32, 0.0  ;;  %v3888_v2 = vpop.f32.mrb[20].mxu0  ;;  %v1644_v4 = vpop.f32.mrb[21].mxu1 }
 0x206   : > { %3118 = vst.msk [vmem:[%s4908_s6 + $0x48] sm:$0xf] %vm3099_vm4, %v3424_v33  ;;  %v3425_v6 = vpack.c.bf16 %v2958_v34, %v2958_v34  ;;  %v3920_v7 = vadd.f32 %v3888_v2, %v3752_v44  ;;  %v2821_v50 = vpop.f32.mrb[21].mxu0  ;;  %v3753_v23 = vpop.f32.mrb[22].mxu1 }
 0x207   : > { %3116 = vst.msk [vmem:[%s4908_s6 + $0x40] sm:$0xf] %vm3099_vm4, %v3422_v46  ;;  %v3423_v24 = vpack.c.bf16 %v2956_v53, %v2956_v53  ;;  %v3921_v25 = vadd.f32 %v2821_v50, %v1644_v4  ;;  %v3889_v40 = vpop.f32.mrb[22].mxu0  ;;  %v1647_v41 = vpop.f32.mrb[23].mxu1 }
 0x208   : > { %3119 = vst.msk [vmem:[%s4908_s6 + $0x4c] sm:$0xf] %vm3099_vm4, %v3425_v6  ;;  %v2929_v42 = vadd.f32 %v3920_v7, %v4900_v38  ;;  %v3922_v0 = vadd.f32 %v3889_v40, %v3753_v23  ;;  %v2824_v52 = vpop.f32.mrb[23].mxu0 }
 0x209   : > { %3117 = vst.msk [vmem:[%s4908_s6 + $0x44] sm:$0xf] %vm3099_vm4, %v3423_v24  ;;  %v2927_v3 = vadd.f32 %v3921_v25, %v4900_v38  ;;  %v3923_v19 = vadd.f32 %v2824_v52, %v1647_v41 }
 0x20a   : > { %v2961_v21 = vmax.f32 %v2929_v42, 0.0  ;;  %v2930_v1 = vadd.f32 %v3922_v0, %v4900_v38 }
 0x20b   : > { %v2959_v22 = vmax.f32 %v2927_v3, 0.0  ;;  %v2928_v37 = vadd.f32 %v3923_v19, %v4900_v38 }
 0x20c   : > { %v3428_v39 = vpack.c.bf16 %v2961_v21, %v2961_v21  ;;  %v2962_v54 = vmax.f32 %v2930_v1, 0.0  ;;  %v3756_v56 = vpop.f32.mrb[24].mxu1 }
 0x20d   : > { %v3426_v30 = vpack.c.bf16 %v2959_v22, %v2959_v22  ;;  %v2960_v60 = vmax.f32 %v2928_v37, 0.0  ;;  %v3892_v61 = vpop.f32.mrb[24].mxu0  ;;  %v1660_v62 = vpop.f32.mrb[25].mxu1 }
 0x20e   : > { %3122 = vst.msk [vmem:[%s4908_s6 + $0x58] sm:$0xf] %vm3099_vm4, %v3428_v39  ;;  %v3429_v63 = vpack.c.bf16 %v2962_v54, %v2962_v54  ;;  %v3924_v49 = vadd.f32 %v3892_v61, %v3756_v56  ;;  %v2837_v14 = vpop.f32.mrb[25].mxu0  ;;  %v3757_v35 = vpop.f32.mrb[26].mxu1 }
 0x20f   : > { %3120 = vst.msk [vmem:[%s4908_s6 + $0x50] sm:$0xf] %vm3099_vm4, %v3426_v30  ;;  %v3427_v27 = vpack.c.bf16 %v2960_v60, %v2960_v60  ;;  %v3925_v9 = vadd.f32 %v2837_v14, %v1660_v62  ;;  %v3893_v5 = vpop.f32.mrb[26].mxu0  ;;  %v1663_v17 = vpop.f32.mrb[27].mxu1 }
 0x210   : > { %3123 = vst.msk [vmem:[%s4908_s6 + $0x5c] sm:$0xf] %vm3099_vm4, %v3429_v63  ;;  %v2933_v18 = vadd.f32 %v3924_v49, %v4900_v38  ;;  %v3926_v20 = vadd.f32 %v3893_v5, %v3757_v35  ;;  %v2840_v28 = vpop.f32.mrb[27].mxu0 }
 0x211   : > { %3121 = vst.msk [vmem:[%s4908_s6 + $0x54] sm:$0xf] %vm3099_vm4, %v3427_v27  ;;  %v2931_v36 = vadd.f32 %v3925_v9, %v4900_v38  ;;  %v3927_v29 = vadd.f32 %v2840_v28, %v1663_v17 }
 0x212   : > { %v2965_v8 = vmax.f32 %v2933_v18, 0.0  ;;  %v2934_v45 = vadd.f32 %v3926_v20, %v4900_v38 }
 0x213   : > { %v2963_v48 = vmax.f32 %v2931_v36, 0.0  ;;  %v2932_v57 = vadd.f32 %v3927_v29, %v4900_v38 }
 0x214   : > { %v3432_v58 = vpack.c.bf16 %v2965_v8, %v2965_v8  ;;  %v2966_v59 = vmax.f32 %v2934_v45, 0.0  ;;  %v3760_v13 = vpop.f32.mrb[28].mxu1 }
 0x215   : > { %v3430_v16 = vpack.c.bf16 %v2963_v48, %v2963_v48  ;;  %v2964_v26 = vmax.f32 %v2932_v57, 0.0  ;;  %v3896_v43 = vpop.f32.mrb[28].mxu0  ;;  %v1676_v47 = vpop.f32.mrb[29].mxu1 }
 0x216   : > { %3126 = vst.msk [vmem:[%s4908_s6 + $0x68] sm:$0xf] %vm3099_vm4, %v3432_v58  ;;  %v3433_v51 = vpack.c.bf16 %v2966_v59, %v2966_v59  ;;  %v3928_v55 = vadd.f32 %v3896_v43, %v3760_v13  ;;  %v2853_v10 = vpop.f32.mrb[29].mxu0  ;;  %v3761_v11 = vpop.f32.mrb[30].mxu1 }
 0x217   : > { %3124 = vst.msk [vmem:[%s4908_s6 + $0x60] sm:$0xf] %vm3099_vm4, %v3430_v16  ;;  %v3431_v12 = vpack.c.bf16 %v2964_v26, %v2964_v26  ;;  %v3929_v15 = vadd.f32 %v2853_v10, %v1676_v47  ;;  %v3897_v31 = vpop.f32.mrb[30].mxu0  ;;  %v1679_v32 = vpop.f32.mrb[31].mxu1 }
 0x218   : > { %3127 = vst.msk [vmem:[%s4908_s6 + $0x6c] sm:$0xf] %vm3099_vm4, %v3433_v51  ;;  %v2937_v33 = vadd.f32 %v3928_v55, %v4900_v38  ;;  %v3930_v34 = vadd.f32 %v3897_v31, %v3761_v11  ;;  %v2856_v44 = vpop.f32.mrb[31].mxu0 }
 0x219   : > { %3125 = vst.msk [vmem:[%s4908_s6 + $0x64] sm:$0xf] %vm3099_vm4, %v3431_v12  ;;  %v2935_v46 = vadd.f32 %v3929_v15, %v4900_v38  ;;  %v3931_v53 = vadd.f32 %v2856_v44, %v1679_v32 }
 0x21a   : > { %v2969_v2 = vmax.f32 %v2937_v33, 0.0  ;;  %v2938_v4 = vadd.f32 %v3930_v34, %v4900_v38 }
 0x21b   : > { %v2967_v6 = vmax.f32 %v2935_v46, 0.0  ;;  %v2936_v7 = vadd.f32 %v3931_v53, %v4900_v38 }
 0x21c   : > { %v3436_v50 = vpack.c.bf16 %v2969_v2, %v2969_v2  ;;  %v2970_v23 = vmax.f32 %v2938_v4, 0.0 }
 0x21d   : > { %v3434_v24 = vpack.c.bf16 %v2967_v6, %v2967_v6  ;;  %v2968_v25 = vmax.f32 %v2936_v7, 0.0 }
 0x21e   : > { %3130 = vst.msk [vmem:[%s4908_s6 + $0x78] sm:$0xf] %vm3099_vm4, %v3436_v50  ;;  %v3437_v40 = vpack.c.bf16 %v2970_v23, %v2970_v23 }
 0x21f   : > { %3128 = vst.msk [vmem:[%s4908_s6 + $0x70] sm:$0xf] %vm3099_vm4, %v3434_v24  ;;  %v3435_v38 = vpack.c.bf16 %v2968_v25, %v2968_v25 }
 0x220   : > { %3131 = vst.msk [vmem:[%s4908_s6 + $0x7c] sm:$0xf] %vm3099_vm4, %v3437_v40 }
 0x221   : > { %3129 = vst.msk [vmem:[%s4908_s6 + $0x74] sm:$0xf] %vm3099_vm4, %v3435_v38 }
 0x222   : > { %4211 = shalt.err (!%p4208_p3)
}
 0x223   : > { %s4212_s25 = scalar_lea.hbm %s5007_s11, 2048  ;;  %s4216_s28 = scalar_lea.hbm %s5063_s3, 4096 }
 0x224   : > { %p4213_p4 = scmp.ne.s32.totalorder %s5007_s11, %s4212_s25  ;;  %p4217_p9 = scmp.lt.u32.totalorder %s5007_s11, %s5063_s3 }
 0x225   : > { %p4218_p10 = scmp.lt.u32.totalorder %s4216_s28, %s4212_s25  ;;  %p4220_p12 = scmp.lt.u32.totalorder %s4212_s25, %s5007_s11 }
 0x226   : > { %p4214_p7 = pnand %p4213_p4, %p4324_p5 }
 0x227   : > { %p4219_p11 = por %p4218_p10, %p4217_p9 }
 0x228   : > { %p4215_p8 = pneg %p4214_p7 }
 0x229   : > { %p4221_p13 = por %p4220_p12, %p4219_p11 }
 0x22b   : > { %p4222_p0 = pnand %p4221_p13, %p4215_p8 }
 0x22d   : > { %4225 = shalt.err (!%p4222_p0)
}
 0x22e   : > { %s4264_s4 = smov 64   ;;  %s4265_s5 = smov 4  }
 0x22f   : > { %4156 = dma.vmem_to_hbm [thread:$0]  (%p4324_p5), %s5009_s8, 2048, %s5007_s11, %s5019_s16, %s4264_s4, %s4264_s4, %s4265_s5  }
 0x230 PF: > { %p4162_p1 = scmp.ge.s32.totalorder %s4260_s15, 2  ;;  %s3161_s6 = sand.u32 1, %s4248_s12  }
 0x231   : > { %s3162_s7 = scalar_lea.sflag [#allocation4], %s3161_s6 }
 0x232   : > { %p4159_p2 = pnand %p4162_p1, %p4328_p6 }
 0x234   : > { %4243 = dma.done.wait (!%p4159_p2), %s3162_s7, 2048  }
 0x235   : > { %4245 = vsyncadd (!%p4159_p2), %s3162_s7, 4294965248  ;;  %p13_p3 = scmp.ge.s32.totalorder %s4311_s18, 4   ;;  %s5066_s12 = smov %s4252_s13 }
 0x236   : > { %s5067_s13 = smov %s4256_s14  ;;  %s5068_s14 = smov %s4322_s21 }
 0x237   : > { %s5069_s15 = smov %s4311_s18  ;;  %15 = sbr.rel (!%p13_p3) target bundleno = 3 (0x3), region = 78 }
 0x23e   :  { %3167 = vsyncpa [#allocation4], 1 }
 0x23f   :  { %3169 = vsyncpa [#allocation4 + $0x1], 1 }

</bundles_post_ra>
